<compile_context>
chip_gen: v7x
topology: tpu7x:2x2x1
jax: 0.10.0
libtpu: 0.0.40
codegen_flags: <defaults>
</compile_context>

<pallas_src>
import math

import jax
import jax.numpy as jnp
from jax import lax
from jax.experimental import pallas as pl
from jax.experimental.pallas import tpu as pltpu

# ----------------------- small, module-consistent sizes ---------------------
BATCH = 2
N_CHANNELS = 64          # hardcoded as `n_channels` in the PyTorch module
INPUT_SIZE = 16          # config.offset
HIDDEN = 32              # config.hidden_size
FC_SIZE = 1024
OUTPUT_SIZE = 5
EPS = 1e-5               # nn.LayerNorm default eps


# ------------------------------- helpers ------------------------------------
def _lstm_h_pair(gates):
    """LSTM cell output for both directions at once, zero initial (h, c).

    gates: (..., 6H) packed as [i_fwd i_bwd | g_fwd g_bwd | o_fwd o_bwd].
    With c_prev == 0:  h = sigmoid(o) * tanh(sigmoid(i) * tanh(g)).
    Returns (..., 2H) laid out as [h_fwd | h_bwd].
    """
    g2 = 2 * HIDDEN
    i = jax.nn.sigmoid(gates[:, 0:g2])
    g = jnp.tanh(gates[:, g2:2 * g2])
    o = jax.nn.sigmoid(gates[:, 2 * g2:3 * g2])
    return o * jnp.tanh(i * g)


def _layer_norm(x, gamma, beta):
    mu = jnp.mean(x, axis=-1, keepdims=True)
    var = jnp.mean((x - mu) ** 2, axis=-1, keepdims=True)
    return (x - mu) * lax.rsqrt(var + EPS) * gamma + beta


# ------------- kernel 1: BiLSTM features, all channels in one shot ----------
def feat_kernel(x_ref, w1_ref, b1_ref, ln_g_ref, ln_b_ref, w2_ref, b2_ref,
                out_ref):
    # x_ref:  (B*C, F)   one row per (batch, channel)
    # w1_ref: (F, 6H),  b1_ref: (1, 6H)     gate layout [i_f i_b|g_f g_b|o_f o_b]
    # w2_ref: (2H, 6H), b2_ref: (1, 6H)
    # out_ref:(B*C, 4H)  per-row layout [h1_f | h1_b | h2_f | h2_b]
    x = x_ref[...]
    g1 = jnp.dot(x, w1_ref[...], preferred_element_type=jnp.float32) + b1_ref[...]
    h1 = _lstm_h_pair(g1)                                   # (B*C, 2H) = [h1_f|h1_b]
    normed = _layer_norm(h1, ln_g_ref[...], ln_b_ref[...])
    g2 = jnp.dot(normed, w2_ref[...], preferred_element_type=jnp.float32) + b2_ref[...]
    h2 = _lstm_h_pair(g2)                                   # (B*C, 2H) = [h2_f|h2_b]
    out_ref[...] = jnp.concatenate([h1, h2], axis=-1)       # (B*C, 4H), lane-dense


def extract_features(x_rows, p):
    rows, _ = x_rows.shape
    # Single invocation, whole arrays resident in VMEM (everything is < 0.2 MiB).
    return pl.pallas_call(
        feat_kernel,
        out_shape=jax.ShapeDtypeStruct((rows, 4 * HIDDEN), jnp.float32),
    )(x_rows, p["w1"], p["b1"], p["ln_g"], p["ln_b"], p["w2"], p["b2"])


# ---------------- kernel 2: projection MLP (Linear-ReLU-LN-Linear) ----------
def project_kernel(flat_ref, w1_ref, b1_ref, ln_g_ref, ln_b_ref, w2_ref,
                   b2_ref, out_ref, acc_ref):
    k = pl.program_id(0)

    @pl.when(k == 0)
    def _():
        acc_ref[...] = jnp.zeros_like(acc_ref)

    # bf16 x bf16 on the MXU with f32 accumulation (weights streamed as bf16).
    acc_ref[...] += jnp.dot(flat_ref[...].astype(jnp.bfloat16), w1_ref[...],
                            preferred_element_type=jnp.float32)

    @pl.when(k == pl.num_programs(0) - 1)
    def _():
        y = jnp.maximum(acc_ref[...] + b1_ref[...], 0.0)          # ReLU
        yn = _layer_norm(y, ln_g_ref[...], ln_b_ref[...])
        out_ref[...] = (jnp.dot(yn, w2_ref[...],
                                preferred_element_type=jnp.float32)
                        + b2_ref[...])


def project(flat, p):
    B, K = flat.shape
    tk = min(2048, K)                     # 2048x1024 bf16 block = 4 MiB
    assert K % tk == 0
    grid_spec = pltpu.PrefetchScalarGridSpec(
        num_scalar_prefetch=0,
        grid=(K // tk,),
        in_specs=[
            pl.BlockSpec((B, tk), lambda k: (0, k)),
            pl.BlockSpec((tk, FC_SIZE), lambda k: (k, 0)),
            pl.BlockSpec((1, FC_SIZE), lambda k: (0, 0)),
            pl.BlockSpec((1, FC_SIZE), lambda k: (0, 0)),
            pl.BlockSpec((1, FC_SIZE), lambda k: (0, 0)),
            pl.BlockSpec((FC_SIZE, OUTPUT_SIZE), lambda k: (0, 0)),
            pl.BlockSpec((1, OUTPUT_SIZE), lambda k: (0, 0)),
        ],
        out_specs=pl.BlockSpec((B, OUTPUT_SIZE), lambda k: (0, 0)),
        scratch_shapes=[pltpu.VMEM((B, FC_SIZE), jnp.float32)],
    )
    # TODO(synk): on v7x the FC_SIZE output columns could be split across the
    # 2 TensorCores with a leading "parallel" axis, but the fused LayerNorm
    # then needs a cross-core reduction; kept single-core for correctness.
    return pl.pallas_call(
        project_kernel,
        out_shape=jax.ShapeDtypeStruct((B, OUTPUT_SIZE), jnp.float32),
        grid_spec=grid_spec,
        compiler_params=pltpu.CompilerParams(
            dimension_semantics=("arbitrary",),
            vmem_limit_bytes=32 * 1024 * 1024),
    )(flat, p["w1"], p["b1"], p["ln_g"], p["ln_b"], p["w2"], p["b2"])


# ------------------------------ full forward --------------------------------
def bilstm_forward(x, feat_p, proj_p):
    # x: (B, C, F)  -- PyTorch layout (batch, channel, offset)
    B, C, F = x.shape
    x_rows = x.reshape(B * C, F)               # contiguous -> free reshape
    feats = extract_features(x_rows, feat_p)   # (B*C, 4H)
    flat = feats.reshape(B, C * 4 * HIDDEN)    # contiguous -> free reshape
    return project(flat, proj_p)               # (B, 5)


# --------------------------- parameter construction -------------------------
def init_params(key):
    h, f = HIDDEN, INPUT_SIZE
    keys = jax.random.split(key, 16)
    it = iter(keys)

    def u(k, shape, bound):
        return jax.random.uniform(k, shape, jnp.float32, -bound, bound)

    kl = 1.0 / math.sqrt(h)
    raw = {
        # LSTM 1 (input F -> H, bidirectional), PyTorch gate order (i, f, g, o)
        "W_ih1_f": u(next(it), (4 * h, f), kl),
        "W_ih1_b": u(next(it), (4 * h, f), kl),
        "b_ih1_f": u(next(it), (4 * h,), kl),
        "b_hh1_f": u(next(it), (4 * h,), kl),
        "b_ih1_b": u(next(it), (4 * h,), kl),
        "b_hh1_b": u(next(it), (4 * h,), kl),
        # LSTM 2 (input 2H -> H, bidirectional)
        "W_ih2_f": u(next(it), (4 * h, 2 * h), kl),
        "W_ih2_b": u(next(it), (4 * h, 2 * h), kl),
        "b_ih2_f": u(next(it), (4 * h,), kl),
        "b_hh2_f": u(next(it), (4 * h,), kl),
        "b_ih2_b": u(next(it), (4 * h,), kl),
        "b_hh2_b": u(next(it), (4 * h,), kl),
        # LayerNorm over 2H (PyTorch default init)
        "ln1_g": jnp.ones((2 * h,), jnp.float32),
        "ln1_b": jnp.zeros((2 * h,), jnp.float32),
    }
    in1 = 4 * h * N_CHANNELS
    k1 = 1.0 / math.sqrt(in1)
    k2 = 1.0 / math.sqrt(FC_SIZE)
    raw.update({
        "Wp1": u(next(it), (FC_SIZE, in1), k1),
        "bp1": u(next(it), (FC_SIZE,), k1),
        "ln2_g": jnp.ones((FC_SIZE,), jnp.float32),
        "ln2_b": jnp.zeros((FC_SIZE,), jnp.float32),
        "Wp2": u(next(it), (OUTPUT_SIZE, FC_SIZE), k2),
        "bp2": u(next(it), (OUTPUT_SIZE,), k2),
    })
    # NOTE: recurrent weights W_hh are omitted -- with seq_len == 1 and zero
    # initial state they contribute exactly zero to the forward pass.

    def pack_lstm(Wf, Wb, bf, bb):
        # Drop the (unused) forget gate; pack columns [i_f i_b|g_f g_b|o_f o_b].
        def gate(W, lo):
            return W[lo:lo + h, :].T                       # (in, H)
        w = jnp.concatenate([gate(Wf, 0), gate(Wb, 0),
                             gate(Wf, 2 * h), gate(Wb, 2 * h),
                             gate(Wf, 3 * h), gate(Wb, 3 * h)], axis=1)
        b = jnp.concatenate([bf[0:h], bb[0:h],
                             bf[2 * h:3 * h], bb[2 * h:3 * h],
                             bf[3 * h:4 * h], bb[3 * h:4 * h]])[None, :]
        return w, b

    w1, b1 = pack_lstm(raw["W_ih1_f"], raw["W_ih1_b"],
                       raw["b_ih1_f"] + raw["b_hh1_f"],
                       raw["b_ih1_b"] + raw["b_hh1_b"])
    w2, b2 = pack_lstm(raw["W_ih2_f"], raw["W_ih2_b"],
                       raw["b_ih2_f"] + raw["b_hh2_f"],
                       raw["b_ih2_b"] + raw["b_hh2_b"])
    feat_p = {
        "w1": w1, "b1": b1,
        "ln_g": raw["ln1_g"][None, :], "ln_b": raw["ln1_b"][None, :],
        "w2": w2, "b2": b2,
    }

    # Kernel 1 emits per-channel features ordered [h1_f h1_b h2_f h2_b]; the
    # PyTorch flatten ordering is [h1_f h2_f h1_b h2_b].  Permute the rows of
    # Wp1^T at packing time (free) so the flattened slab needs no reordering.
    perm_ch = jnp.concatenate([jnp.arange(0, h), jnp.arange(2 * h, 3 * h),
                               jnp.arange(h, 2 * h), jnp.arange(3 * h, 4 * h)])
    perm = (jnp.arange(N_CHANNELS)[:, None] * (4 * h)
            + perm_ch[None, :]).reshape(-1)
    proj_p = {
        "w1": raw["Wp1"].T[perm].astype(jnp.bfloat16),     # (4H*C, FC) bf16
        "b1": raw["bp1"][None, :],
        "ln_g": raw["ln2_g"][None, :], "ln_b": raw["ln2_b"][None, :],
        "w2": raw["Wp2"].T, "b2": raw["bp2"][None, :],
    }
    return raw, feat_p, proj_p


# ------------------------------ pure-JAX reference ---------------------------
def reference_forward(x, raw, quantize_proj=True):
    B = x.shape[0]
    h = HIDDEN

    def lstm_h(gates):          # PyTorch gate order (i, f, g, o), c_prev == 0
        i = jax.nn.sigmoid(gates[:, 0 * h:1 * h])
        g = jnp.tanh(gates[:, 2 * h:3 * h])
        o = jax.nn.sigmoid(gates[:, 3 * h:4 * h])
        return o * jnp.tanh(i * g)

    def step(xin, W, b_ih, b_hh):
        return lstm_h(xin @ W.T + b_ih + b_hh)

    outs = []
    for i in range(x.shape[1]):
        ch = x[:, i, :]
        h1f = step(ch, raw["W_ih1_f"], raw["b_ih1_f"], raw["b_hh1_f"])
        h1b = step(ch, raw["W_ih1_b"], raw["b_ih1_b"], raw["b_hh1_b"])
        packed = jnp.concatenate([h1f, h1b], axis=-1)
        normed = _layer_norm(packed, raw["ln1_g"], raw["ln1_b"])
        h2f = step(normed, raw["W_ih2_f"], raw["b_ih2_f"], raw["b_hh2_f"])
        h2b = step(normed, raw["W_ih2_b"], raw["b_ih2_b"], raw["b_hh2_b"])
        outs.append(jnp.concatenate([h1f, h2f, h1b, h2b], axis=-1))
    flat = jnp.stack(outs, axis=1).reshape(B, -1)

    Wp1 = raw["Wp1"]
    if quantize_proj:
        # Match the kernel's bf16 streaming of Wp1 / bf16 lhs (f32 accumulate)
        # so the self-test stays meaningful with quantized weights.
        flat = flat.astype(jnp.bfloat16).astype(jnp.float32)
        Wp1 = Wp1.astype(jnp.bfloat16).astype(jnp.float32)
    y = jnp.maximum(flat @ Wp1.T + raw["bp1"], 0.0)
    yn = _layer_norm(y, raw["ln2_g"], raw["ln2_b"])
    return yn @ raw["Wp2"].T + raw["bp2"]


# ----------------------------------- main ------------------------------------
if __name__ == "__main__":
    key = jax.random.PRNGKey(0)
    kx, kp = jax.random.split(key)
    x = jax.random.normal(kx, (BATCH, N_CHANNELS, INPUT_SIZE), jnp.float32)
    raw, feat_p, proj_p = init_params(kp)

    out = jax.block_until_ready(bilstm_forward(x, feat_p, proj_p))
    assert out.shape == (BATCH, OUTPUT_SIZE), out.shape

    ref = jax.block_until_ready(reference_forward(x, raw))
    max_diff = float(jnp.max(jnp.abs(out - ref)))
    assert max_diff < 1e-2, f"mismatch vs reference: {max_diff}"

    print("KERNEL_OK")
</pallas_src>

<mosaic_0001>
module attributes {stable_mosaic.version = 11 : i64} {
  func.func @feat_kernel(%arg0: memref<128x16xf32, #tpu.memory_space<vmem>>, %arg1: memref<16x192xf32, #tpu.memory_space<vmem>>, %arg2: memref<1x192xf32, #tpu.memory_space<vmem>>, %arg3: memref<1x64xf32, #tpu.memory_space<vmem>>, %arg4: memref<1x64xf32, #tpu.memory_space<vmem>>, %arg5: memref<64x192xf32, #tpu.memory_space<vmem>>, %arg6: memref<1x192xf32, #tpu.memory_space<vmem>>, %arg7: memref<128x128xf32, #tpu.memory_space<vmem>>) attributes {dimension_semantics = [], scalar_prefetch = 0 : i64, scratch_operands = 0 : i64, tpu.core_type = #tpu.core_type<tc>} {
    %c0 = arith.constant 0 : index
    %c0_0 = arith.constant 0 : index
    %0 = vector.load %arg0[%c0, %c0_0] : memref<128x16xf32, #tpu.memory_space<vmem>>, vector<128x16xf32>
    %c0_1 = arith.constant 0 : index
    %c0_2 = arith.constant 0 : index
    %1 = vector.load %arg1[%c0_1, %c0_2] : memref<16x192xf32, #tpu.memory_space<vmem>>, vector<16x192xf32>
    %cst = arith.constant dense<0.000000e+00> : vector<128x192xf32>
    %2 = tpu.matmul %0, %1, %cst {dimension_numbers = #tpu.dot_dimension_numbers<[1], [0], [0], [1], [0, 0, 1, 1], [], []>} : vector<128x16xf32>, vector<16x192xf32>, vector<128x192xf32> -> vector<128x192xf32>
    %c0_3 = arith.constant 0 : index
    %c0_4 = arith.constant 0 : index
    %3 = vector.load %arg2[%c0_3, %c0_4] : memref<1x192xf32, #tpu.memory_space<vmem>>, vector<1x192xf32>
    %4 = vector.broadcast %3 : vector<1x192xf32> to vector<128x192xf32>
    %5 = arith.addf %2, %4 : vector<128x192xf32>
    %6 = vector.extract_strided_slice %5 {offsets = [0, 0], sizes = [128, 64], strides = [1, 1]} : vector<128x192xf32> to vector<128x64xf32>
    %7 = arith.negf %6 : vector<128x64xf32>
    %8 = math.exp %7 : vector<128x64xf32>
    %cst_5 = arith.constant 1.000000e+00 : f32
    %9 = vector.broadcast %cst_5 : f32 to vector<128x64xf32>
    %10 = arith.addf %9, %8 : vector<128x64xf32>
    %11 = arith.divf %9, %10 : vector<128x64xf32>
    %12 = vector.extract_strided_slice %5 {offsets = [0, 64], sizes = [128, 64], strides = [1, 1]} : vector<128x192xf32> to vector<128x64xf32>
    %13 = math.tanh %12 : vector<128x64xf32>
    %14 = vector.extract_strided_slice %5 {offsets = [0, 128], sizes = [128, 64], strides = [1, 1]} : vector<128x192xf32> to vector<128x64xf32>
    %15 = arith.negf %14 : vector<128x64xf32>
    %16 = math.exp %15 : vector<128x64xf32>
    %cst_6 = arith.constant 1.000000e+00 : f32
    %17 = vector.broadcast %cst_6 : f32 to vector<128x64xf32>
    %18 = arith.addf %17, %16 : vector<128x64xf32>
    %19 = arith.divf %17, %18 : vector<128x64xf32>
    %20 = arith.mulf %11, %13 : vector<128x64xf32>
    %21 = math.tanh %20 : vector<128x64xf32>
    %22 = arith.mulf %19, %21 : vector<128x64xf32>
    %c0_7 = arith.constant 0 : index
    %c0_8 = arith.constant 0 : index
    %23 = vector.load %arg3[%c0_7, %c0_8] : memref<1x64xf32, #tpu.memory_space<vmem>>, vector<1x64xf32>
    %c0_9 = arith.constant 0 : index
    %c0_10 = arith.constant 0 : index
    %24 = vector.load %arg4[%c0_9, %c0_10] : memref<1x64xf32, #tpu.memory_space<vmem>>, vector<1x64xf32>
    %cst_11 = arith.constant dense<0.000000e+00> : vector<128xf32>
    %25 = vector.multi_reduction <add>, %22, %cst_11 [1] : vector<128x64xf32> to vector<128xf32>
    %26 = vector.shape_cast %25 : vector<128xf32> to vector<128x1xf32>
    %cst_12 = arith.constant 6.400000e+01 : f32
    %27 = vector.broadcast %cst_12 : f32 to vector<128x1xf32>
    %28 = arith.divf %26, %27 : vector<128x1xf32>
    %29 = vector.broadcast %28 : vector<128x1xf32> to vector<128x64xf32>
    %30 = arith.subf %22, %29 : vector<128x64xf32>
    %31 = arith.mulf %30, %30 : vector<128x64xf32>
    %cst_13 = arith.constant dense<0.000000e+00> : vector<128xf32>
    %32 = vector.multi_reduction <add>, %31, %cst_13 [1] : vector<128x64xf32> to vector<128xf32>
    %33 = vector.shape_cast %32 : vector<128xf32> to vector<128x1xf32>
    %cst_14 = arith.constant 6.400000e+01 : f32
    %34 = vector.broadcast %cst_14 : f32 to vector<128x1xf32>
    %35 = arith.divf %33, %34 : vector<128x1xf32>
    %36 = vector.broadcast %28 : vector<128x1xf32> to vector<128x64xf32>
    %37 = arith.subf %22, %36 : vector<128x64xf32>
    %cst_15 = arith.constant 9.99999974E-6 : f32
    %38 = vector.broadcast %cst_15 : f32 to vector<128x1xf32>
    %39 = arith.addf %35, %38 : vector<128x1xf32>
    %40 = math.rsqrt %39 : vector<128x1xf32>
    %41 = vector.broadcast %40 : vector<128x1xf32> to vector<128x64xf32>
    %42 = arith.mulf %37, %41 : vector<128x64xf32>
    %43 = vector.broadcast %23 : vector<1x64xf32> to vector<128x64xf32>
    %44 = arith.mulf %42, %43 : vector<128x64xf32>
    %45 = vector.broadcast %24 : vector<1x64xf32> to vector<128x64xf32>
    %46 = arith.addf %44, %45 : vector<128x64xf32>
    %c0_16 = arith.constant 0 : index
    %c0_17 = arith.constant 0 : index
    %47 = vector.load %arg5[%c0_16, %c0_17] : memref<64x192xf32, #tpu.memory_space<vmem>>, vector<64x192xf32>
    %cst_18 = arith.constant dense<0.000000e+00> : vector<128x192xf32>
    %48 = tpu.matmul %46, %47, %cst_18 {dimension_numbers = #tpu.dot_dimension_numbers<[1], [0], [0], [1], [0, 0, 1, 1], [], []>} : vector<128x64xf32>, vector<64x192xf32>, vector<128x192xf32> -> vector<128x192xf32>
    %c0_19 = arith.constant 0 : index
    %c0_20 = arith.constant 0 : index
    %49 = vector.load %arg6[%c0_19, %c0_20] : memref<1x192xf32, #tpu.memory_space<vmem>>, vector<1x192xf32>
    %50 = vector.broadcast %49 : vector<1x192xf32> to vector<128x192xf32>
    %51 = arith.addf %48, %50 : vector<128x192xf32>
    %52 = vector.extract_strided_slice %51 {offsets = [0, 0], sizes = [128, 64], strides = [1, 1]} : vector<128x192xf32> to vector<128x64xf32>
    %53 = arith.negf %52 : vector<128x64xf32>
    %54 = math.exp %53 : vector<128x64xf32>
    %cst_21 = arith.constant 1.000000e+00 : f32
    %55 = vector.broadcast %cst_21 : f32 to vector<128x64xf32>
    %56 = arith.addf %55, %54 : vector<128x64xf32>
    %57 = arith.divf %55, %56 : vector<128x64xf32>
    %58 = vector.extract_strided_slice %51 {offsets = [0, 64], sizes = [128, 64], strides = [1, 1]} : vector<128x192xf32> to vector<128x64xf32>
    %59 = math.tanh %58 : vector<128x64xf32>
    %60 = vector.extract_strided_slice %51 {offsets = [0, 128], sizes = [128, 64], strides = [1, 1]} : vector<128x192xf32> to vector<128x64xf32>
    %61 = arith.negf %60 : vector<128x64xf32>
    %62 = math.exp %61 : vector<128x64xf32>
    %cst_22 = arith.constant 1.000000e+00 : f32
    %63 = vector.broadcast %cst_22 : f32 to vector<128x64xf32>
    %64 = arith.addf %63, %62 : vector<128x64xf32>
    %65 = arith.divf %63, %64 : vector<128x64xf32>
    %66 = arith.mulf %57, %59 : vector<128x64xf32>
    %67 = math.tanh %66 : vector<128x64xf32>
    %68 = arith.mulf %65, %67 : vector<128x64xf32>
    %69 = tpu.concatenate %22, %68 in 1 : vector<128x64xf32>, vector<128x64xf32> -> vector<128x128xf32>
    %c0_23 = arith.constant 0 : index
    %c0_24 = arith.constant 0 : index
    %70 = vector.load %arg7[%c0_23, %c0_24] : memref<128x128xf32, #tpu.memory_space<vmem>>, vector<128x128xf32>
    tpu.vector_store %arg7[%c0_23, %c0_24], %69 {strides = array<i32>} : memref<128x128xf32, #tpu.memory_space<vmem>>, vector<128x128xf32>,
    return
  }
}

</mosaic_0001>

<bundles_post_ra>
// kernel: tpu_custom_call.1
= control target key start
LH: loop header
LB: loop body
LE: loop exit
PB: predicated region body
PF: predicated region fallthrough
CT: control target
= control target key end

     0   :  { %12 = vsyncpa [#allocation3], 0  ;;  %s3047_s0 = inlined_call_operand.vmem [shape: f32[128,16], index: 0, kind: input, shape index: {}]   ;;  %s3048_s1 = inlined_call_operand.vmem [shape: f32[16,192], index: 1, kind: input, shape index: {}]   ;;  %s3049_s2 = inlined_call_operand.vmem [shape: f32[1,192], index: 2, kind: input, shape index: {}]   ;;  %s3050_s3 = inlined_call_operand.hbm [shape: f32[1,64], index: 3, kind: input, shape index: {}]   ;;  %s3051_s4 = inlined_call_operand.hbm [shape: f32[1,64], index: 4, kind: input, shape index: {}]   ;;  %s3052_s5 = inlined_call_operand.vmem [shape: f32[64,192], index: 5, kind: input, shape index: {}]   ;;  %s3053_s6 = inlined_call_operand.vmem [shape: f32[1,192], index: 6, kind: input, shape index: {}]   ;;  %s3054_s7 = inlined_call_operand.hbm [shape: f32[128,128], index: 7, kind: output, shape index: {}]  }
   0x1   :  { %13 = vsyncpa [#allocation6], 0 }
   0x2   :  { %14 = vsyncpa [#allocation4], 0  ;;  %s2161_s24 = smov [#allocation2]   ;;  %s2162_s26 = smov [#allocation5]  }
   0x3   :  { %s27_s25 = sshll.u32 %s2161_s24, 4  ;;  %s37_s27 = sshll.u32 %s2162_s26, 4  ;;  %s28_s25 = int_to_ptr.vmem [resolvable:$true] %s27_s25  ;;  %s38_s27 = int_to_ptr.vmem [resolvable:$true] %s37_s27 }
   0x4   :  { %s2089_s30 = scalar_lea.hbm %s3050_s3, 16 }
   0x5   :  { %p2090_p0 = scmp.ne.s32.totalorder %s3050_s3, %s2089_s30  ;;  %p2093_p1 = scmp.lt.u32.totalorder %s2089_s30, %s3050_s3 }
   0x7   :  { %p2095_p2 = pnand %p2093_p1, %p2090_p0 }
   0x9   :  { %2098 = shalt.err (!%p2095_p2)
}
   0xa   :  { %s2099_s12 = scalar_lea.vmem %s28_s25, 16  ;;  %s2103_s13 = scalar_lea.vmem %s28_s25, 32 }
   0xb   :  { %p2100_p3 = scmp.ne.s32.totalorder %s28_s25, %s2099_s12  ;;  %p2104_p4 = scmp.lt.s32.totalorder %s28_s25, %s28_s25 }
   0xc   :  { %p2105_p5 = scmp.lt.s32.totalorder %s2103_s13, %s2099_s12 }
   0xe   :  { %p2106_p6 = por %p2105_p5, %p2104_p4 }
  0x10   :  { %p2107_p7 = pnand %p2106_p6, %p2100_p3 }
  0x12   :  { %2110 = shalt.err (!%p2107_p7)
}
  0x13   :  { %30 = dma.hbm_to_vmem [thread:$0]  %s3050_s3, 16, %s28_s25, [#allocation3]  }
  0x14   :  { %s2111_s18 = scalar_lea.hbm %s3051_s4, 16 }
  0x15   :  { %p2112_p8 = scmp.ne.s32.totalorder %s3051_s4, %s2111_s18  ;;  %p2115_p9 = scmp.lt.u32.totalorder %s2111_s18, %s3051_s4 }
  0x17   :  { %p2117_p10 = pnand %p2115_p9, %p2112_p8 }
  0x19   :  { %2120 = shalt.err (!%p2117_p10)
}
  0x1a   :  { %s2121_s23 = scalar_lea.vmem %s38_s27, 16  ;;  %s2125_s24 = scalar_lea.vmem %s38_s27, 32 }
  0x1b   :  { %p2122_p11 = scmp.ne.s32.totalorder %s38_s27, %s2121_s23  ;;  %p2126_p12 = scmp.lt.s32.totalorder %s38_s27, %s38_s27 }
  0x1c   :  { %p2127_p13 = scmp.lt.s32.totalorder %s2125_s24, %s2121_s23 }
  0x1e   :  { %p2128_p0 = por %p2127_p13, %p2126_p12 }
  0x20   :  { %p2129_p1 = pnand %p2128_p0, %p2122_p11 }
  0x22   :  { %2132 = shalt.err (!%p2129_p1)
}
  0x23   :  { %40 = dma.hbm_to_vmem [thread:$0]  %s3051_s4, 16, %s38_s27, [#allocation6]  }
  0x24   :  { %2155 = dma.done.wait [#allocation3], 16  }
  0x25   :  { %2156 = vsyncadd [#allocation3], 4294967280 }
  0x26   :  { %2157 = dma.done.wait [#allocation6], 16  }
  0x27   :  { %2158 = vsyncadd [#allocation6], 4294967280  ;;  %v2163_v0 = vmov 0.0   ;;  %v68_v1 = vld [vmem:[%s3048_s1 + $0x8] sm:$0xff]  ;;  %v70_v2 = vld [vmem:[%s3048_s1 + $0x18] sm:$0xff]  ;;  %vm83_vm0 = vcmask 130048   ;;  %v73_v23 = vlaneseq }
  0x28   :  { %196 = vmatprep.mubr.f32.mxu0 %v2163_v0  ;;  %1015 = vmatprep.mubr.f32.mxu1 %v2163_v0  ;;  %v67_v3 = vld [vmem:[%s3048_s1] sm:$0xff]  ;;  %v1638_v4 = vpack.c.bf16 %v70_v2, %v68_v1  ;;  %v69_v5 = vld [vmem:[%s3048_s1 + $0x10] sm:$0xff]  ;;  %v52_v8 = vld [vmem:[%s3047_s0 + $0x8] sm:$0xff]  ;;  %vm615_vm1 = vcmask 523264  }
  0x29   :  { %v1640_v6 = vpack.c.bf16 %v69_v5, %v67_v3  ;;  %v51_v7 = vld [vmem:[%s3047_s0] sm:$0xff]  ;;  %v53_v9 = vld [vmem:[%s3047_s0 + $0x10] sm:$0xff]  ;;  %v54_v10 = vld [vmem:[%s3047_s0 + $0x18] sm:$0xff]  ;;  %v2326_v24 = vshrl.u32 %v73_v23, 7 }
  0x2a   :  { %1639 = vmatprep.subr.bf16.mxu0 %v1638_v4  ;;  %v55_v11 = vld [vmem:[%s3047_s0 + $0x20] sm:$0xff]  ;;  %v56_v12 = vld [vmem:[%s3047_s0 + $0x28] sm:$0xff]  ;;  %v57_v13 = vld [vmem:[%s3047_s0 + $0x30] sm:$0xff] }
  0x2b   :  { %1641 = vmatpush1.bf16.msra.mxu0 %v1640_v6  ;;  %v58_v14 = vld [vmem:[%s3047_s0 + $0x38] sm:$0xff]  ;;  %v59_v15 = vld [vmem:[%s3047_s0 + $0x40] sm:$0xff]  ;;  %v60_v16 = vld [vmem:[%s3047_s0 + $0x48] sm:$0xff]  ;;  %v75_v25 = vsub.s32 0, %v2326_v24  ;;  %v79_v27 = vsub.s32 1, %v2326_v24 }
  0x2c   :  { %v61_v17 = vld [vmem:[%s3047_s0 + $0x50] sm:$0xff]  ;;  %v62_v18 = vld [vmem:[%s3047_s0 + $0x58] sm:$0xff]  ;;  %v63_v19 = vld [vmem:[%s3047_s0 + $0x60] sm:$0xff] }
  0x2d   :  { %v64_v20 = vld [vmem:[%s3047_s0 + $0x68] sm:$0xff]  ;;  %v65_v21 = vld [vmem:[%s3047_s0 + $0x70] sm:$0xff]  ;;  %v66_v22 = vld [vmem:[%s3047_s0 + $0x78] sm:$0xff]  ;;  %s2164_s0 = smov 64  }
  0x2e   :  { %1540 = vmatmul.mubr.msk.f32.vlgmr.msra.gmra.mrb[0].mxu0 %vm83_vm0, %v51_v7  ;;  %v71_v26 = vld [vmem:[%s3049_s2] sm:$0x3] }
  0x2f   :  { %202 = vmatprep.mubr.f32.mxu0 %v2163_v0  ;;  %v2335_v28 = vrot.slane %v71_v26, %v75_v25  ;;  %v2339_v29 = vrot.slane %v71_v26, %v79_v27 }
  0x32   :  { %1541 = vmatmul.mubr.msk.f32.gmra.mrb[2].mxu0 %vm83_vm0, %v52_v8 }
  0x33   :  { %208 = vmatprep.mubr.f32.mxu0 %v2163_v0 }
  0x36   :  { %1542 = vmatmul.mubr.msk.f32.gmra.mrb[4].mxu0 %vm83_vm0, %v53_v9 }
  0x37   :  { %214 = vmatprep.mubr.f32.mxu0 %v2163_v0 }
  0x3a   :  { %1543 = vmatmul.mubr.msk.f32.gmra.mrb[6].mxu0 %vm83_vm0, %v54_v10 }
  0x3b   :  { %220 = vmatprep.mubr.f32.mxu0 %v2163_v0 }
  0x3e   :  { %1544 = vmatmul.mubr.msk.f32.gmra.mrb[8].mxu0 %vm83_vm0, %v55_v11 }
  0x3f   :  { %226 = vmatprep.mubr.f32.mxu0 %v2163_v0 }
  0x42   :  { %1545 = vmatmul.mubr.msk.f32.gmra.mrb[10].mxu0 %vm83_vm0, %v56_v12 }
  0x43   :  { %232 = vmatprep.mubr.f32.mxu0 %v2163_v0 }
  0x46   :  { %1546 = vmatmul.mubr.msk.f32.gmra.mrb[12].mxu0 %vm83_vm0, %v57_v13 }
  0x47   :  { %238 = vmatprep.mubr.f32.mxu0 %v2163_v0 }
  0x4a   :  { %1547 = vmatmul.mubr.msk.f32.gmra.mrb[14].mxu0 %vm83_vm0, %v58_v14 }
  0x4b   :  { %244 = vmatprep.mubr.f32.mxu0 %v2163_v0 }
  0x4e   :  { %1548 = vmatmul.mubr.msk.f32.gmra.mrb[16].mxu0 %vm83_vm0, %v59_v15 }
  0x4f   :  { %250 = vmatprep.mubr.f32.mxu0 %v2163_v0 }
  0x52   :  { %1549 = vmatmul.mubr.msk.f32.gmra.mrb[18].mxu0 %vm83_vm0, %v60_v16 }
  0x53   :  { %256 = vmatprep.mubr.f32.mxu0 %v2163_v0 }
  0x56   :  { %1550 = vmatmul.mubr.msk.f32.gmra.mrb[20].mxu0 %vm83_vm0, %v61_v17 }
  0x57   :  { %262 = vmatprep.mubr.f32.mxu0 %v2163_v0 }
  0x5a   :  { %1551 = vmatmul.mubr.msk.f32.gmra.mrb[22].mxu0 %vm83_vm0, %v62_v18 }
  0x5b   :  { %268 = vmatprep.mubr.f32.mxu0 %v2163_v0 }
  0x5e   :  { %1552 = vmatmul.mubr.msk.f32.gmra.mrb[24].mxu0 %vm83_vm0, %v63_v19 }
  0x5f   :  { %274 = vmatprep.mubr.f32.mxu0 %v2163_v0 }
  0x62   :  { %1553 = vmatmul.mubr.msk.f32.gmra.mrb[26].mxu0 %vm83_vm0, %v64_v20 }
  0x63   :  { %280 = vmatprep.mubr.f32.mxu0 %v2163_v0 }
  0x66   :  { %1554 = vmatmul.mubr.msk.f32.gmra.mrb[28].mxu0 %vm83_vm0, %v65_v21 }
  0x67   :  { %286 = vmatprep.mubr.f32.mxu0 %v2163_v0 }
  0x6a   :  { %1555 = vmatmul.mubr.msk.f32.gmra.mrb[30].mxu0 %vm83_vm0, %v66_v22 }
  0x6b   :  { %1009 = vmatprep.mubr.f32.mxu0 %v2163_v0 }
 0x101   :  { %v198_v30 = vpop.f32.mrb[0].mxu0 }
 0x102   :  { %v2342_v31 = vadd.f32 %v198_v30, %v2335_v28  ;;  %v200_v32 = vpop.f32.mrb[1].mxu0 }
 0x103   :  { %v2345_v33 = vadd.f32 %v200_v32, %v2339_v29 }
 0x105   :  { %v204_v34 = vpop.f32.mrb[2].mxu0 }
 0x106   :  { %v2348_v35 = vadd.f32 %v204_v34, %v2335_v28  ;;  %v2350_v36 = vpop.f32.mrb[3].mxu0 }
 0x108   :  { %1673 = vtanh.f32 %v2348_v35 }
 0x109   :  { %v210_v37 = vpop.f32.mrb[4].mxu0 }
 0x10a   :  { %v2354_v38 = vadd.f32 %v210_v37, %v2335_v28  ;;  %v2356_v39 = vpop.f32.mrb[5].mxu0 }
 0x10c   :  { %1675 = vtanh.f32 %v2354_v38 }
 0x10d   :  { %v216_v40 = vpop.f32.mrb[6].mxu0 }
 0x10e   :  { %v2360_v41 = vadd.f32 %v216_v40, %v2335_v28  ;;  %v2362_v42 = vpop.f32.mrb[7].mxu0 }
 0x110   :  { %1677 = vtanh.f32 %v2360_v41 }
 0x111   :  { %v222_v43 = vpop.f32.mrb[8].mxu0 }
 0x112   :  { %v1674_v44 = vpop.eup %1673  ;;  %v2365_v45 = vpop.f32.mrb[9].mxu0  ;;  %v2369_v46 = vadd.f32 %v222_v43, %v2335_v28 }
 0x113   :  { %519 = vrot.lane.b32.xlu0 %v1674_v44, %s2164_s0 }
 0x114   :  { %1679 = vtanh.f32 %v2369_v46 }
 0x115   :  { %v228_v47 = vpop.f32.mrb[10].mxu0 }
 0x116   :  { %v1676_v48 = vpop.eup %1675  ;;  %v2371_v49 = vpop.f32.mrb[11].mxu0  ;;  %v2376_v52 = vadd.f32 %v228_v47, %v2335_v28 }
 0x117   :  { %521 = vrot.lane.b32.xlu0 %v1676_v48, %s2164_s0  ;;  %v1557_v48 = vmul.f32 -1.442695, %v2348_v35  ;;  %v219_v35 = vadd.f32 %v2362_v42, %v2339_v29 }
 0x118   :  { %1681 = vtanh.f32 %v2376_v52 }
 0x119   :  { %v234_v50 = vpop.f32.mrb[12].mxu0 }
 0x11a   :  { %v1678_v51 = vpop.eup %1677  ;;  %v2378_v53 = vpop.f32.mrb[13].mxu0  ;;  %v2385_v56 = vadd.f32 %v234_v50, %v2335_v28  ;;  %v1558_v50 = vmul.f32 -1.442695, %v2354_v38  ;;  %v1560_v38 = vmul.f32 -1.442695, %v2369_v46 }
 0x11b   :  { %523 = vrot.lane.b32.xlu1 %v1678_v51, %s2164_s0  ;;  %v207_v51 = vadd.f32 %v2350_v36, %v2339_v29  ;;  %v1575_v36 = vmul.f32 -1.442695, %v219_v35 }
 0x11c   :  { %1683 = vtanh.f32 %v2385_v56 }
 0x11d   :  { %v240_v54 = vpop.f32.mrb[14].mxu0 }
 0x11e   :  { %v2382_v55 = vpop.f32.mrb[15].mxu0  ;;  %v1680_v59 = vpop.eup %1679  ;;  %v2391_v60 = vadd.f32 %v240_v54, %v2335_v28  ;;  %v213_v54 = vadd.f32 %v2356_v39, %v2339_v29 }
 0x11f   :  { %525 = vrot.lane.b32.xlu1 %v1680_v59, %s2164_s0  ;;  %v1573_v59 = vmul.f32 -1.442695, %v207_v51 }
 0x120   :  { %1685 = vtanh.f32 %v2391_v60 }
 0x121   :  { %v246_v57 = vpop.f32.mrb[16].mxu0 }
 0x122   :  { %v2387_v58 = vpop.f32.mrb[17].mxu0  ;;  %v1682_v63 = vpop.eup %1681  ;;  %v2398_v1 = vadd.f32 %v246_v57, %v2335_v28  ;;  %v1559_v57 = vmul.f32 -1.442695, %v2360_v41  ;;  %v1561_v41 = vmul.f32 -1.442695, %v2376_v52 }
 0x123   :  { %527 = vrot.lane.b32.xlu0 %v1682_v63, %s2164_s0 }
 0x124   :  { %1687 = vtanh.f32 %v2398_v1 }
 0x125   :  { %v252_v61 = vpop.f32.mrb[18].mxu0 }
 0x126   :  { %v2394_v62 = vpop.f32.mrb[19].mxu0  ;;  %v2405_v4 = vadd.f32 %v252_v61, %v2335_v28  ;;  %v1684_v6 = vpop.eup %1683  ;;  %v1574_v61 = vmul.f32 -1.442695, %v213_v54 }
 0x127   :  { %529 = vrot.lane.b32.xlu1 %v1684_v6, %s2164_s0 }
 0x128   :  { %1689 = vtanh.f32 %v2405_v4 }
 0x129   :  { %v258_v2 = vpop.f32.mrb[20].mxu0 }
 0x12a   :  { %v2401_v3 = vpop.f32.mrb[21].mxu0  ;;  %v1686_v9 = vpop.eup %1685  ;;  %v2414_v11 = vadd.f32 %v258_v2, %v2335_v28 }
 0x12b   :  { %531 = vrot.lane.b32.xlu0 %v1686_v9, %s2164_s0  ;;  %v225_v9 = vadd.f32 %v2365_v45, %v2339_v29 }
 0x12c   :  { %1691 = vtanh.f32 %v2414_v11 }
 0x12d   :  { %v264_v5 = vpop.f32.mrb[22].mxu0  ;;  %v1576_v46 = vmul.f32 -1.442695, %v225_v9  ;;  %v1566_v9 = vmul.f32 -1.442695, %v2414_v11 }
 0x12e   :  { %v2407_v7 = vpop.f32.mrb[23].mxu0  ;;  %v1688_v13 = vpop.eup %1687  ;;  %v2421_v15 = vadd.f32 %v264_v5, %v2335_v28 }
 0x12f   :  { %533 = vrot.lane.b32.xlu1 %v1688_v13, %s2164_s0 }
 0x130   :  { %1693 = vtanh.f32 %v2421_v15 }
 0x131   :  { %v270_v8 = vpop.f32.mrb[24].mxu0 }
 0x132   :  { %v2411_v10 = vpop.f32.mrb[25].mxu0  ;;  %v1690_v19 = vpop.eup %1689  ;;  %v2432_v21 = vadd.f32 %v270_v8, %v2335_v28 }
 0x133   :  { %535 = vrot.lane.b32.xlu0 %v1690_v19, %s2164_s0 }
 0x134   :  { %1695 = vtanh.f32 %v2432_v21 }
 0x135   :  { %v276_v12 = vpop.f32.mrb[26].mxu0 }
 0x136   :  { %v2417_v14 = vpop.f32.mrb[27].mxu0  ;;  %v1692_v32 = vpop.eup %1691  ;;  %v2443_v34 = vadd.f32 %v276_v12, %v2335_v28 }
 0x137   :  { %537 = vrot.lane.b32.xlu1 %v1692_v32, %s2164_s0 }
 0x138   :  { %1697 = vtanh.f32 %v2443_v34 }
 0x139   :  { %v282_v16 = vpop.f32.mrb[28].mxu0  ;;  %1699 = vtanh.f32 %v2342_v31 }
 0x13a   :  { %v2425_v17 = vadd.f32 %v282_v16, %v2335_v28  ;;  %v284_v18 = vpop.f32.mrb[29].mxu0  ;;  %v1694_v37 = vpop.eup %1693  ;;  %v231_v16 = vadd.f32 %v2371_v49, %v2339_v29  ;;  %v237_v49 = vadd.f32 %v2378_v53, %v2339_v29  ;;  %v249_v53 = vadd.f32 %v2387_v58, %v2339_v29 }
 0x13b   :  { %v2429_v20 = vadd.f32 %v284_v18, %v2339_v29  ;;  %539 = vrot.lane.b32.xlu0 %v1694_v37, %s2164_s0  ;;  %v1562_v18 = vmul.f32 -1.442695, %v2385_v56  ;;  %v1563_v37 = vmul.f32 -1.442695, %v2391_v60  ;;  %v243_v60 = vadd.f32 %v2382_v55, %v2339_v29 }
 0x13c   :  { %1701 = vtanh.f32 %v2425_v17  ;;  %v1578_v51 = vmul.f32 -1.442695, %v237_v49 }
 0x13d   :  { %v288_v22 = vpop.f32.mrb[30].mxu0 }
 0x13e   :  { %v2436_v23 = vadd.f32 %v288_v22, %v2335_v28  ;;  %v290_v26 = vpop.f32.mrb[31].mxu0  ;;  %v1696_v40 = vpop.eup %1695 }
 0x13f   :  { %v2439_v30 = vadd.f32 %v290_v26, %v2339_v29  ;;  %541 = vrot.lane.b32.xlu1 %v1696_v40, %s2164_s0  ;;  %v1577_v26 = vmul.f32 -1.442695, %v231_v16 }
 0x140   :  { %1703 = vtanh.f32 %v2436_v23 }
 0x141   :  { %1705 = vpow2.f32 %v1557_v48  ;;  %v1564_v48 = vmul.f32 -1.442695, %v2398_v1 }
 0x142   :  { %v1698_v43 = vpop.eup %1697  ;;  %1707 = vpow2.f32 %v1558_v50 }
 0x143   :  { %543 = vrot.lane.b32.xlu0 %v1698_v43, %s2164_s0  ;;  %v1700_v28 = vpop.eup %1699  ;;  %1709 = vpow2.f32 %v1559_v57 }
 0x144   :  { %1711 = vpow2.f32 %v1573_v59 }
 0x145   :  { %1713 = vpow2.f32 %v1574_v61 }
 0x146   :  { %v1702_v44 = vpop.eup %1701  ;;  %1715 = vpow2.f32 %v1560_v38  ;;  %v1556_v38 = vmul.f32 -1.442695, %v2342_v31  ;;  %v255_v31 = vadd.f32 %v2394_v62, %v2339_v29 }
 0x147   :  { %517 = vrot.lane.b32.xlu0 %v1700_v28, %s2164_s0  ;;  %545 = vrot.lane.b32.xlu1 %v1702_v44, %s2164_s0 }
 0x148   :  { %v1581_v62 = vmul.f32 -1.442695, %v255_v31 }
 0x14a   :  { %v1704_v47 = vpop.eup %1703 }
 0x14b   :  { %547 = vrot.lane.b32.xlu1 %v1704_v47, %s2164_s0  ;;  %v1706_v63 = vpop.eup %1705 }
 0x14c   :  { %v342_v2 = vadd.f32 1.0, %v1706_v63  ;;  %v1708_v5 = vpop.eup %1707  ;;  %v1565_v63 = vmul.f32 -1.442695, %v2405_v4 }
 0x14d   :  { %v343_v6 = vadd.f32 1.0, %v1708_v5  ;;  %v1710_v39 = vpop.eup %1709  ;;  %v1579_v5 = vmul.f32 -1.442695, %v243_v60  ;;  %v1568_v60 = vmul.f32 -1.442695, %v2432_v21 }
 0x14e   :  { %1717 = vrcp.f32 %v342_v2  ;;  %v1712_v8 = vpop.eup %1711  ;;  %v344_v12 = vadd.f32 1.0, %v1710_v39  ;;  %v1569_v21 = vmul.f32 -1.442695, %v2443_v34  ;;  %v1570_v34 = vmul.f32 -1.442695, %v2425_v17 }
 0x14f   :  { %1719 = vpow2.f32 %v1575_v36  ;;  %v1714_v42 = vpop.eup %1713  ;;  %v454_v13 = vadd.f32 1.0, %v1712_v8  ;;  %v1580_v36 = vmul.f32 -1.442695, %v249_v53 }
 0x150   :  { %1721 = vrcp.f32 %v343_v6  ;;  %v455_v19 = vadd.f32 1.0, %v1714_v42  ;;  %v1716_v22 = vpop.eup %1715 }
 0x151   :  { %1723 = vpow2.f32 %v1561_v41  ;;  %v345_v43 = vadd.f32 1.0, %v1716_v22 }
 0x152   :  { %1725 = vrcp.f32 %v344_v12 }
 0x153   :  { %1727 = vrcp.f32 %v454_v13 }
 0x154   :  { %1729 = vpow2.f32 %v1576_v46 }
 0x155   :  { %1731 = vpow2.f32 %v1562_v18 }
 0x156   :  { %1733 = vrcp.f32 %v455_v19 }
 0x158   :  { %v1718_v52 = vpop.eup %1717 }
 0x159   :  { %v1720_v45 = vpop.eup %1719 }
 0x15a   :  { %v1722_v56 = vpop.eup %1721  ;;  %v456_v28 = vadd.f32 1.0, %v1720_v45  ;;  %v1567_v45 = vmul.f32 -1.442695, %v2421_v15 }
 0x15b   :  { %v1724_v47 = vpop.eup %1723 }
 0x15c   :  { %v1726_v54 = vpop.eup %1725  ;;  %v346_v57 = vadd.f32 1.0, %v1724_v47 }
 0x15d   :  { %v1728_v61 = vpop.eup %1727 }
 0x15e   :  { %v1730_v1 = vpop.eup %1729 }
 0x15f   :  { %v1732_v2 = vpop.eup %1731  ;;  %v457_v39 = vadd.f32 1.0, %v1730_v1 }
 0x160   :  { %v1734_v55 = vpop.eup %1733  ;;  %v347_v41 = vadd.f32 1.0, %v1732_v2 }
 0x185   :  { %v520_v32 = vpop.permute.xlu0 %519 }
 0x186   :  { %v566_v40 = vmul.f32 %v1718_v52, %v520_v32  ;;  %v261_v32 = vadd.f32 %v2401_v3, %v2339_v29 }
 0x188   :  { %1735 = vtanh.f32 %v566_v40  ;;  %v1582_v15 = vmul.f32 -1.442695, %v261_v32 }
 0x189   :  { %1737 = vpow2.f32 %v1577_v26  ;;  %v522_v44 = vpop.permute.xlu0 %521 }
 0x18a   :  { %1739 = vpow2.f32 %v1563_v37  ;;  %v567_v50 = vmul.f32 %v1722_v56, %v522_v44 }
 0x18b   :  { %1741 = vrcp.f32 %v345_v43 }
 0x18c   :  { %1743 = vtanh.f32 %v567_v50 }
 0x18d   :  { %1745 = vrcp.f32 %v456_v28  ;;  %v524_v59 = vpop.permute.xlu1 %523 }
 0x18e   :  { %1747 = vpow2.f32 %v1564_v48  ;;  %v568_v35 = vmul.f32 %v1726_v54, %v524_v59 }
 0x18f   :  { %1749 = vpow2.f32 %v1578_v51 }
 0x190   :  { %1751 = vtanh.f32 %v568_v35 }
 0x191   :  { %1753 = vrcp.f32 %v346_v57  ;;  %v526_v16 = vpop.permute.xlu1 %525 }
 0x192   :  { %v1736_v6 = vpop.eup %1735  ;;  %1755 = vpow2.f32 %v1565_v63  ;;  %v267_v63 = vadd.f32 %v2407_v7, %v2339_v29 }
 0x193   :  { %v1738_v58 = vpop.eup %1737  ;;  %1757 = vpow2.f32 %v1556_v38  ;;  %v2482_v8 = vmul.f32 %v1736_v6, %v1728_v61 }
 0x194   :  { %v1740_v4 = vpop.eup %1739  ;;  %1759 = vpow2.f32 %v1579_v5  ;;  %v458_v46 = vadd.f32 1.0, %v1738_v58  ;;  %v273_v58 = vadd.f32 %v2411_v10, %v2339_v29 }
 0x195   :  { %v1742_v12 = vpop.eup %1741  ;;  %1761 = vpow2.f32 %v1580_v36  ;;  %v619_v42 = vsel %vm615_vm1, %v2482_v8, 0.0  ;;  %v348_v19 = vadd.f32 1.0, %v1740_v4  ;;  %v528_v56 = vpop.permute.xlu0 %527 }
 0x196   :  { %v1744_v13 = vpop.eup %1743  ;;  %1763 = vrcp.f32 %v457_v39  ;;  %620 = vadd.xlane.f32.xlu0 %v619_v42  ;;  %v569_v22 = vmul.f32 %v1742_v12, %v526_v16  ;;  %v1583_v39 = vmul.f32 -1.442695, %v267_v63 }
 0x197   :  { %v1746_v18 = vpop.eup %1745  ;;  %1765 = vrcp.f32 %v347_v41  ;;  %v2489_v52 = vmul.f32 %v1744_v13, %v1734_v55 }
 0x198   :  { %v1748_v26 = vpop.eup %1747  ;;  %1767 = vpow2.f32 %v1566_v9 }
 0x199   :  { %v1750_v11 = vpop.eup %1749  ;;  %1769 = vtanh.f32 %v569_v22  ;;  %v622_v37 = vsel %vm615_vm1, %v2489_v52, 0.0  ;;  %v349_v49 = vadd.f32 1.0, %v1748_v26  ;;  %v530_v35 = vpop.permute.xlu1 %529  ;;  %v279_v22 = vadd.f32 %v2417_v14, %v2339_v29 }
 0x19a   :  { %v1752_v40 = vpop.eup %1751  ;;  %1771 = vrcp.f32 %v458_v46  ;;  %623 = vadd.xlane.f32.xlu1 %v622_v37  ;;  %v459_v47 = vadd.f32 1.0, %v1750_v11  ;;  %v1584_v46 = vmul.f32 -1.442695, %v273_v58 }
 0x19b   :  { %v1754_v43 = vpop.eup %1753  ;;  %1773 = vrcp.f32 %v348_v19  ;;  %v2496_v28 = vmul.f32 %v1752_v40, %v1746_v18 }
 0x19c   :  { %v1756_v44 = vpop.eup %1755  ;;  %1775 = vpow2.f32 %v1581_v62  ;;  %v570_v48 = vmul.f32 %v1754_v43, %v528_v56  ;;  %v1585_v43 = vmul.f32 -1.442695, %v279_v22 }
 0x19d   :  { %v2498_v3 = vpop.eup %1757  ;;  %1777 = vpow2.f32 %v1567_v45  ;;  %v625_v50 = vsel %vm615_vm1, %v2496_v28, 0.0  ;;  %v350_v57 = vadd.f32 1.0, %v1756_v44  ;;  %v532_v7 = vpop.permute.xlu0 %531  ;;  %v1571_v45 = vmul.f32 -1.442695, %v2436_v23 }
 0x19e   :  { %v1760_v51 = vpop.eup %1759  ;;  %1779 = vtanh.f32 %v570_v48  ;;  %626 = vadd.xlane.f32.xlu0 %v625_v50  ;;  %v1572_v48 = vmul.f32 -1.442695, %v2345_v33  ;;  %v341_v63 = vadd.f32 1.0, %v2498_v3 }
 0x19f   :  { %v1762_v54 = vpop.eup %1761  ;;  %1781 = vrcp.f32 %v349_v49  ;;  %v460_v61 = vadd.f32 1.0, %v1760_v51 }
 0x1a0   :  { %v1764_v53 = vpop.eup %1763  ;;  %1783 = vrcp.f32 %v459_v47  ;;  %v461_v38 = vadd.f32 1.0, %v1762_v54 }
 0x1a1   :  { %v1766_v59 = vpop.eup %1765  ;;  %1785 = vpow2.f32 %v1582_v15  ;;  %v534_v16 = vpop.permute.xlu1 %533 }
 0x1a2   :  { %v1768_v1 = vpop.eup %1767  ;;  %1787 = vpow2.f32 %v1568_v60  ;;  %v571_v2 = vmul.f32 %v1766_v59, %v530_v35  ;;  %v1586_v60 = vmul.f32 -1.442695, %v2429_v20 }
 0x1a3   :  { %v1770_v5 = vpop.eup %1769  ;;  %1789 = vrcp.f32 %v350_v57  ;;  %v351_v4 = vadd.f32 1.0, %v1768_v1 }
 0x1a4   :  { %v1772_v55 = vpop.eup %1771  ;;  %1791 = vtanh.f32 %v571_v2  ;;  %v2506_v36 = vmul.f32 %v1770_v5, %v1764_v53 }
 0x1a5   :  { %v1774_v6 = vpop.eup %1773  ;;  %1793 = vrcp.f32 %v460_v61  ;;  %v536_v49 = vpop.permute.xlu0 %535 }
 0x1a6   :  { %v1776_v41 = vpop.eup %1775  ;;  %1795 = vrcp.f32 %v461_v38  ;;  %v572_v31 = vmul.f32 %v1774_v6, %v532_v7  ;;  %v628_v9 = vsel %vm615_vm1, %v2506_v36, 0.0 }
 0x1a7   :  { %v1778_v12 = vpop.eup %1777  ;;  %1797 = vpow2.f32 %v1569_v21  ;;  %629 = vadd.xlane.f32.xlu0 %v628_v9  ;;  %v462_v11 = vadd.f32 1.0, %v1776_v41 }
 0x1a8   :  { %v1780_v42 = vpop.eup %1779  ;;  %1799 = vtanh.f32 %v572_v31  ;;  %v352_v19 = vadd.f32 1.0, %v1778_v12 }
 0x1a9   :  { %v1782_v13 = vpop.eup %1781  ;;  %1801 = vpow2.f32 %v1583_v39  ;;  %v2513_v10 = vmul.f32 %v1780_v42, %v1772_v55  ;;  %v538_v33 = vpop.permute.xlu1 %537  ;;  %v1587_v55 = vmul.f32 -1.442695, %v2439_v30 }
 0x1aa   :  { %v1784_v18 = vpop.eup %1783  ;;  %1803 = vrcp.f32 %v351_v4  ;;  %v573_v26 = vmul.f32 %v1782_v13, %v534_v16 }
 0x1ab   :  { %v1786_v62 = vpop.eup %1785  ;;  %1805 = vpow2.f32 %v1570_v34  ;;  %v631_v17 = vsel %vm615_vm1, %v2513_v10, 0.0 }
 0x1ac   :  { %v1788_v32 = vpop.eup %1787  ;;  %1807 = vtanh.f32 %v573_v26  ;;  %632 = vadd.xlane.f32.xlu1 %v631_v17  ;;  %v463_v23 = vadd.f32 1.0, %v1786_v62 }
 0x1ad   :  { %v1790_v37 = vpop.eup %1789  ;;  %1809 = vpow2.f32 %v1584_v46  ;;  %v353_v29 = vadd.f32 1.0, %v1788_v32  ;;  %v540_v6 = vpop.permute.xlu0 %539 }
 0x1ae   :  { %v1792_v40 = vpop.eup %1791  ;;  %1811 = vrcp.f32 %v352_v19  ;;  %v574_v14 = vmul.f32 %v1790_v37, %v536_v49 }
 0x1af   :  { %v1794_v56 = vpop.eup %1793  ;;  %1813 = vrcp.f32 %v462_v11  ;;  %v2520_v44 = vmul.f32 %v1792_v40, %v1784_v18 }
 0x1b0   :  { %v1796_v47 = vpop.eup %1795  ;;  %1815 = vpow2.f32 %v1571_v45 }
 0x1b1   :  { %v1798_v15 = vpop.eup %1797  ;;  %1817 = vtanh.f32 %v574_v14  ;;  %v634_v50 = vsel %vm615_vm1, %v2520_v44, 0.0  ;;  %v542_v30 = vpop.permute.xlu1 %541 }
 0x1b2   :  { %v1800_v51 = vpop.eup %1799  ;;  %1819 = vpow2.f32 %v1585_v43  ;;  %635 = vadd.xlane.f32.xlu0 %v634_v50  ;;  %v354_v59 = vadd.f32 1.0, %v1798_v15 }
 0x1b3   :  { %v1802_v54 = vpop.eup %1801  ;;  %1821 = vrcp.f32 %v353_v29  ;;  %v2526_v57 = vmul.f32 %v1800_v51, %v1794_v56 }
 0x1b4   :  { %v1804_v53 = vpop.eup %1803  ;;  %1823 = vpow2.f32 %v1572_v48  ;;  %v464_v2 = vadd.f32 1.0, %v1802_v54 }
 0x1b5   :  { %v1806_v61 = vpop.eup %1805  ;;  %1825 = vrcp.f32 %v463_v23  ;;  %v575_v35 = vmul.f32 %v1804_v53, %v538_v33  ;;  %v637_v1 = vsel %vm615_vm1, %v2526_v57, 0.0  ;;  %v544_v11 = vpop.permute.xlu0 %543 }
 0x1b6   :  { %v1808_v38 = vpop.eup %1807  ;;  %1827 = vpow2.f32 %v1586_v60  ;;  %638 = vadd.xlane.f32.xlu1 %v637_v1  ;;  %v355_v3 = vadd.f32 1.0, %v1806_v61 }
 0x1b7   :  { %v1810_v20 = vpop.eup %1809  ;;  %1829 = vtanh.f32 %v575_v35  ;;  %v2531_v5 = vmul.f32 %v1808_v38, %v1796_v47 }
 0x1b8   :  { %v1812_v21 = vpop.eup %1811  ;;  %1831 = vrcp.f32 %v354_v59  ;;  %v465_v31 = vadd.f32 1.0, %v1810_v20 }
 0x1b9   :  { %v1814_v39 = vpop.eup %1813  ;;  %1833 = vrcp.f32 %v341_v63  ;;  %v576_v58 = vmul.f32 %v1812_v21, %v540_v6  ;;  %v640_v7 = vsel %vm615_vm1, %v2531_v5, 0.0  ;;  %v518_v14 = vpop.permute.xlu0 %517 }
 0x1ba   :  { %v1816_v41 = vpop.eup %1815  ;;  %1835 = vrcp.f32 %v464_v2  ;;  %641 = vadd.xlane.f32.xlu0 %v640_v7  ;;  %v546_v15 = vpop.permute.xlu1 %545 }
 0x1bb   :  { %v1818_v4 = vpop.eup %1817  ;;  %1837 = vtanh.f32 %v576_v58  ;;  %v356_v13 = vadd.f32 1.0, %v1816_v41 }
 0x1bc   :  { %v1820_v9 = vpop.eup %1819  ;;  %1839 = vpow2.f32 %v1587_v55  ;;  %v2536_v12 = vmul.f32 %v1818_v4, %v1814_v39 }
 0x1bd   :  { %v1822_v34 = vpop.eup %1821  ;;  %1841 = vrcp.f32 %v355_v3  ;;  %v466_v22 = vadd.f32 1.0, %v1820_v9 }
 0x1be   :  { %v1824_v42 = vpop.eup %1823  ;;  %v577_v46 = vmul.f32 %v1822_v34, %v542_v30  ;;  %v643_v16 = vsel %vm615_vm1, %v2536_v12, 0.0  ;;  %1843 = vrcp.f32 %v465_v31  ;;  %v548_v61 = vpop.permute.xlu1 %547 }
 0x1bf   :  { %v1826_v18 = vpop.eup %1825  ;;  %644 = vadd.xlane.f32.xlu1 %v643_v16  ;;  %v453_v45 = vadd.f32 1.0, %v1824_v42 }
 0x1c0   :  { %v1828_v19 = vpop.eup %1827  ;;  %1845 = vtanh.f32 %v577_v46 }
 0x1c1   :  { %v1830_v26 = vpop.eup %1829  ;;  %1847 = vrcp.f32 %v356_v13  ;;  %v467_v43 = vadd.f32 1.0, %v1828_v19 }
 0x1c2   :  { %v1832_v62 = vpop.eup %1831  ;;  %v2540_v17 = vmul.f32 %v1830_v26, %v1826_v18  ;;  %1849 = vrcp.f32 %v466_v22 }
 0x1c3   :  { %v1834_v32 = vpop.eup %1833  ;;  %v578_v37 = vmul.f32 %v1832_v62, %v544_v11 }
 0x1c4   :  { %v1836_v40 = vpop.eup %1835  ;;  %v646_v49 = vsel %vm615_vm1, %v2540_v17, 0.0  ;;  %v565_v23 = vmul.f32 %v1834_v32, %v518_v14 }
 0x1c5   :  { %v1838_v56 = vpop.eup %1837  ;;  %1851 = vtanh.f32 %v578_v37  ;;  %647 = vadd.xlane.f32.xlu0 %v646_v49 }
 0x1c6   :  { %v1840_v29 = vpop.eup %1839  ;;  %v2544_v47 = vmul.f32 %v1838_v56, %v1836_v40  ;;  %1853 = vrcp.f32 %v453_v45 }
 0x1c7   :  { %v1842_v48 = vpop.eup %1841  ;;  %1855 = vrcp.f32 %v467_v43  ;;  %v468_v53 = vadd.f32 1.0, %v1840_v29 }
 0x1c8   :  { %v579_v50 = vmul.f32 %v1842_v48, %v546_v15  ;;  %v649_v51 = vsel %vm615_vm1, %v2544_v47, 0.0  ;;  %v1844_v60 = vpop.eup %1843  ;;  %1857 = vtanh.f32 %v565_v23 }
 0x1c9   :  { %650 = vadd.xlane.f32.xlu1 %v649_v51 }
 0x1ca   :  { %v1846_v54 = vpop.eup %1845  ;;  %1859 = vtanh.f32 %v579_v50 }
 0x1cb   :  { %v2548_v59 = vmul.f32 %v1846_v54, %v1844_v60  ;;  %v1848_v33 = vpop.eup %1847  ;;  %1861 = vrcp.f32 %v468_v53  ;;  %v870_v53 = vld [vmem:[%s3052_s5 + $0x8] sm:$0xff] }
 0x1cc   :  { %v580_v63 = vmul.f32 %v1848_v33, %v548_v61  ;;  %v1850_v1 = vpop.eup %1849  ;;  %v872_v33 = vld [vmem:[%s3052_s5 + $0x18] sm:$0xff]  ;;  %v869_v61 = vld [vmem:[%s3052_s5] sm:$0xff] }
 0x1cd   :  { %v652_v35 = vsel %vm615_vm1, %v2548_v59, 0.0 }
 0x1ce   :  { %653 = vadd.xlane.f32.xlu0 %v652_v35  ;;  %1863 = vtanh.f32 %v580_v63  ;;  %v1642_v35 = vpack.c.bf16 %v872_v33, %v870_v53  ;;  %v884_v53 = vld [vmem:[%s3052_s5 + $0x78] sm:$0xff]  ;;  %v881_v33 = vld [vmem:[%s3052_s5 + $0x60] sm:$0xff] }
 0x1cf   :  { %v1852_v38 = vpop.eup %1851 }
 0x1d0   :  { %v2552_v2 = vmul.f32 %v1852_v38, %v1850_v1  ;;  %v1854_v20 = vpop.eup %1853  ;;  %v871_v1 = vld [vmem:[%s3052_s5 + $0x10] sm:$0xff]  ;;  %1658 = vmatprep.subr.bf16.mxu1 %v1642_v35  ;;  %1643 = vmatprep.subr.bf16.mxu0 %v1642_v35 }
 0x1d1   :  { %v1856_v21 = vpop.eup %1855  ;;  %v883_v35 = vld [vmem:[%s3052_s5 + $0x70] sm:$0xff] }
 0x1d2   :  { %v655_v55 = vsel %vm615_vm1, %v2552_v2, 0.0  ;;  %v1858_v6 = vpop.eup %1857 }
 0x1d3   :  { %656 = vadd.xlane.f32.xlu1 %v655_v55  ;;  %v2556_v3 = vmul.f32 %v1858_v6, %v1854_v20  ;;  %v1644_v20 = vpack.c.bf16 %v871_v1, %v869_v61  ;;  %v874_v6 = vld [vmem:[%s3052_s5 + $0x28] sm:$0xff] }
 0x1d4   :  { %v1860_v39 = vpop.eup %1859 }
 0x1d5   :  { %v2558_v58 = vmul.f32 %v1860_v39, %v1856_v21  ;;  %v616_v7 = vsel %vm615_vm1, %v2556_v3, 0.0  ;;  %v1862_v4 = vpop.eup %1861  ;;  %1662 = vmatpush1.bf16.msra.mxu1 %v1644_v20  ;;  %1645 = vmatpush1.bf16.msra.mxu0 %v1644_v20  ;;  %v876_v39 = vld [vmem:[%s3052_s5 + $0x38] sm:$0xff] }
 0x1d7   :  { %v658_v41 = vsel %vm615_vm1, %v2558_v58, 0.0  ;;  %617 = vadd.xlane.f32.xlu1 %v616_v7  ;;  %v873_v7 = vld [vmem:[%s3052_s5 + $0x20] sm:$0xff] }
 0x1d8   :  { %659 = vadd.xlane.f32.xlu0 %v658_v41  ;;  %v1864_v31 = vpop.eup %1863 }
 0x1d9   :  { %v2564_v9 = vmul.f32 %v1864_v31, %v1862_v4  ;;  %v1646_v31 = vpack.c.bf16 %v876_v39, %v874_v6 }
 0x1db   :  { %v661_v34 = vsel %vm615_vm1, %v2564_v9, 0.0  ;;  %1659 = vmatprep.subr.bf16.mxu1 %v1646_v31  ;;  %1647 = vmatprep.subr.bf16.mxu0 %v1646_v31 }
 0x1dc   :  { %662 = vadd.xlane.f32.xlu0 %v661_v34  ;;  %v875_v34 = vld [vmem:[%s3052_s5 + $0x30] sm:$0xff] }
 0x223   :  { %v621_v30 = vpop.xlane.xlu0 %620 }
 0x224   :  { %v666_v42 = vmul.f32 0.015625, %v621_v30 }
 0x226   :  { %v2569_v13 = vsub.f32 %v2482_v8, %v666_v42  ;;  %v1648_v42 = vpack.c.bf16 %v875_v34, %v873_v7 }
 0x227   :  { %v624_v46 = vpop.xlane.xlu1 %623 }
 0x228   :  { %v667_v16 = vmul.f32 0.015625, %v624_v46  ;;  %v698_v18 = vmul.f32 %v2569_v13, %v2569_v13  ;;  %1663 = vmatpush1.bf16.msra.mxu1 %v1648_v42  ;;  %1649 = vmatpush1.bf16.msra.mxu0 %v1648_v42 }
 0x22a   :  { %v2574_v19 = vsub.f32 %v2489_v52, %v667_v16  ;;  %v716_v22 = vsel %vm615_vm1, %v698_v18, 0.0 }
 0x22b   :  { %v627_v26 = vpop.xlane.xlu0 %626  ;;  %717 = vadd.xlane.f32.xlu1 %v716_v22 }
 0x22c   :  { %v668_v62 = vmul.f32 0.015625, %v627_v26  ;;  %v699_v11 = vmul.f32 %v2574_v19, %v2574_v19 }
 0x22e   :  { %v2580_v32 = vsub.f32 %v2496_v28, %v668_v62  ;;  %v719_v45 = vsel %vm615_vm1, %v699_v11, 0.0 }
 0x22f   :  { %720 = vadd.xlane.f32.xlu0 %v719_v45 }
 0x230   :  { %v700_v37 = vmul.f32 %v2580_v32, %v2580_v32 }
 0x232   :  { %v722_v40 = vsel %vm615_vm1, %v700_v37, 0.0  ;;  %v878_v37 = vld [vmem:[%s3052_s5 + $0x48] sm:$0xff] }
 0x233   :  { %723 = vadd.xlane.f32.xlu1 %v722_v40  ;;  %v880_v40 = vld [vmem:[%s3052_s5 + $0x58] sm:$0xff] }
 0x234   :  { %v630_v43 = vpop.xlane.xlu0 %629 }
 0x235   :  { %v669_v49 = vmul.f32 0.015625, %v630_v43  ;;  %v877_v43 = vld [vmem:[%s3052_s5 + $0x40] sm:$0xff] }
 0x237   :  { %v2587_v56 = vsub.f32 %v2506_v36, %v669_v49 }
 0x239   :  { %v633_v29 = vpop.xlane.xlu1 %632  ;;  %v701_v14 = vmul.f32 %v2587_v56, %v2587_v56 }
 0x23a   :  { %v670_v48 = vmul.f32 0.015625, %v633_v29  ;;  %v1650_v29 = vpack.c.bf16 %v880_v40, %v878_v37 }
 0x23b   :  { %v725_v15 = vsel %vm615_vm1, %v701_v14, 0.0  ;;  %v879_v14 = vld [vmem:[%s3052_s5 + $0x50] sm:$0xff] }
 0x23c   :  { %v2593_v23 = vsub.f32 %v2513_v10, %v670_v48  ;;  %726 = vadd.xlane.f32.xlu0 %v725_v15  ;;  %v1652_v48 = vpack.c.bf16 %v879_v14, %v877_v43  ;;  %1660 = vmatprep.subr.bf16.mxu1 %v1650_v29 }
 0x23d   :  { %1651 = vmatprep.subr.bf16.mxu0 %v1650_v29 }
 0x23e   :  { %v702_v50 = vmul.f32 %v2593_v23, %v2593_v23  ;;  %1664 = vmatpush1.bf16.msra.mxu1 %v1652_v48  ;;  %1653 = vmatpush1.bf16.msra.mxu0 %v1652_v48 }
 0x23f   :  { %v636_v51 = vpop.xlane.xlu0 %635 }
 0x240   :  { %v671_v60 = vmul.f32 0.015625, %v636_v51  ;;  %v728_v54 = vsel %vm615_vm1, %v702_v50, 0.0 }
 0x241   :  { %729 = vadd.xlane.f32.xlu1 %v728_v54  ;;  %v882_v54 = vld [vmem:[%s3052_s5 + $0x68] sm:$0xff] }
 0x242   :  { %v2608_v63 = vsub.f32 %v2520_v44, %v671_v60  ;;  %v1654_v61 = vpack.c.bf16 %v884_v53, %v882_v54 }
 0x243   :  { %v639_v38 = vpop.xlane.xlu1 %638 }
 0x244   :  { %v672_v21 = vmul.f32 0.015625, %v639_v38  ;;  %v703_v55 = vmul.f32 %v2608_v63, %v2608_v63  ;;  %v1656_v38 = vpack.c.bf16 %v883_v35, %v881_v33  ;;  %1661 = vmatprep.subr.bf16.mxu1 %v1654_v61  ;;  %1655 = vmatprep.subr.bf16.mxu0 %v1654_v61 }
 0x246   :  { %v2625_v41 = vsub.f32 %v2526_v57, %v672_v21  ;;  %v731_v4 = vsel %vm615_vm1, %v703_v55, 0.0  ;;  %1665 = vmatpush1.bf16.msra.mxu1 %v1656_v38  ;;  %1657 = vmatpush1.bf16.msra.mxu0 %v1656_v38 }
 0x247   :  { %732 = vadd.xlane.f32.xlu0 %v731_v4  ;;  %v642_v30 = vpop.xlane.xlu0 %641 }
 0x248   :  { %v673_v46 = vmul.f32 0.015625, %v642_v30  ;;  %v704_v16 = vmul.f32 %v2625_v41, %v2625_v41 }
 0x24a   :  { %v2634_v18 = vsub.f32 %v2531_v5, %v673_v46  ;;  %v734_v22 = vsel %vm615_vm1, %v704_v16, 0.0 }
 0x24b   :  { %735 = vadd.xlane.f32.xlu1 %v734_v22 }
 0x24c   :  { %v645_v26 = vpop.xlane.xlu1 %644  ;;  %v705_v62 = vmul.f32 %v2634_v18, %v2634_v18 }
 0x24d   :  { %v674_v11 = vmul.f32 0.015625, %v645_v26 }
 0x24e   :  { %v737_v45 = vsel %vm615_vm1, %v705_v62, 0.0 }
 0x24f   :  { %v2650_v49 = vsub.f32 %v2536_v12, %v674_v11  ;;  %738 = vadd.xlane.f32.xlu0 %v737_v45 }
 0x251   :  { %v706_v15 = vmul.f32 %v2650_v49, %v2650_v49 }
 0x252   :  { %v648_v50 = vpop.xlane.xlu0 %647 }
 0x253   :  { %v675_v51 = vmul.f32 0.015625, %v648_v50  ;;  %v740_v60 = vsel %vm615_vm1, %v706_v15, 0.0 }
 0x254   :  { %741 = vadd.xlane.f32.xlu1 %v740_v60 }
 0x255   :  { %v2671_v1 = vsub.f32 %v2540_v17, %v675_v51 }
 0x256   :  { %v651_v20 = vpop.xlane.xlu1 %650 }
 0x257   :  { %v676_v21 = vmul.f32 0.015625, %v651_v20  ;;  %v707_v55 = vmul.f32 %v2671_v1, %v2671_v1 }
 0x259   :  { %v2676_v6 = vsub.f32 %v2544_v47, %v676_v21  ;;  %v743_v39 = vsel %vm615_vm1, %v707_v55, 0.0 }
 0x25a   :  { %744 = vadd.xlane.f32.xlu0 %v743_v39 }
 0x25b   :  { %v654_v7 = vpop.xlane.xlu0 %653  ;;  %v708_v4 = vmul.f32 %v2676_v6, %v2676_v6 }
 0x25c   :  { %v677_v31 = vmul.f32 0.015625, %v654_v7 }
 0x25d   :  { %v746_v34 = vsel %vm615_vm1, %v708_v4, 0.0 }
 0x25e   :  { %v2683_v30 = vsub.f32 %v2548_v59, %v677_v31  ;;  %747 = vadd.xlane.f32.xlu1 %v746_v34 }
 0x260   :  { %v657_v42 = vpop.xlane.xlu1 %656  ;;  %v709_v46 = vmul.f32 %v2683_v30, %v2683_v30 }
 0x261   :  { %v678_v16 = vmul.f32 0.015625, %v657_v42  ;;  %v2712_v42 = vld [vmem:[#allocation2] ss:$0 sm:$0xff] }
 0x262   :  { %v749_v22 = vsel %vm615_vm1, %v709_v46, 0.0 }
 0x263   :  { %v2689_v26 = vsub.f32 %v2552_v2, %v678_v16  ;;  %750 = vadd.xlane.f32.xlu0 %v749_v22  ;;  %v2715_v22 = vld [vmem:[#allocation5] ss:$0 sm:$0xff] }
 0x264   :  { %v618_v62 = vpop.xlane.xlu1 %617 }
 0x265   :  { %v660_v11 = vpop.xlane.xlu0 %659  ;;  %v665_v45 = vmul.f32 0.015625, %v618_v62  ;;  %v710_v37 = vmul.f32 %v2689_v26, %v2689_v26 }
 0x266   :  { %v679_v40 = vmul.f32 0.015625, %v660_v11 }
 0x267   :  { %v2694_v43 = vsub.f32 %v2556_v3, %v665_v45  ;;  %v752_v29 = vsel %vm615_vm1, %v710_v37, 0.0 }
 0x268   :  { %v2698_v14 = vsub.f32 %v2558_v58, %v679_v40  ;;  %753 = vadd.xlane.f32.xlu1 %v752_v29 }
 0x269   :  { %v697_v48 = vmul.f32 %v2694_v43, %v2694_v43  ;;  %v663_v15 = vpop.xlane.xlu0 %662 }
 0x26a   :  { %v711_v50 = vmul.f32 %v2698_v14, %v2698_v14  ;;  %v680_v51 = vmul.f32 0.015625, %v663_v15 }
 0x26b   :  { %v713_v60 = vsel %vm615_vm1, %v697_v48, 0.0 }
 0x26c   :  { %v755_v54 = vsel %vm615_vm1, %v711_v50, 0.0  ;;  %714 = vadd.xlane.f32.xlu1 %v713_v60  ;;  %v2707_v53 = vsub.f32 %v2564_v9, %v680_v51 }
 0x26d   :  { %756 = vadd.xlane.f32.xlu0 %v755_v54 }
 0x26e   :  { %v712_v33 = vmul.f32 %v2707_v53, %v2707_v53 }
 0x270   :  { %v758_v61 = vsel %vm615_vm1, %v712_v33, 0.0 }
 0x271   :  { %759 = vadd.xlane.f32.xlu0 %v758_v61 }
 0x2b8   :  { %v718_v35 = vpop.xlane.xlu1 %717 }
 0x2b9   :  { %v762_v38 = vmul.f32 0.015625, %v718_v35 }
 0x2bb   :  { %v778_v20 = vadd.f32 1e-05, %v762_v38 }
 0x2bc   :  { %v721_v21 = vpop.xlane.xlu0 %720 }
 0x2bd   :  { %1865 = vrsqrt.f32 %v778_v20  ;;  %v763_v55 = vmul.f32 0.015625, %v721_v21 }
 0x2bf   :  { %v779_v39 = vadd.f32 1e-05, %v763_v55 }
 0x2c0   :  { %v724_v7 = vpop.xlane.xlu1 %723 }
 0x2c1   :  { %1867 = vrsqrt.f32 %v779_v39  ;;  %v764_v4 = vmul.f32 0.015625, %v724_v7 }
 0x2c3   :  { %v780_v31 = vadd.f32 1e-05, %v764_v4 }
 0x2c5   :  { %1869 = vrsqrt.f32 %v780_v31 }
 0x2c7   :  { %v1866_v34 = vpop.eup %1865 }
 0x2c8   :  { %v810_v46 = vmul.f32 %v1866_v34, %v2569_v13 }
 0x2c9   :  { %v727_v16 = vpop.xlane.xlu0 %726 }
 0x2ca   :  { %v765_v62 = vmul.f32 0.015625, %v727_v16  ;;  %v832_v11 = vmul.f32 %v2712_v42, %v810_v46 }
 0x2cb   :  { %v1868_v45 = vpop.eup %1867 }
 0x2cc   :  { %v781_v37 = vadd.f32 1e-05, %v765_v62  ;;  %v854_v40 = vadd.f32 %v2715_v22, %v832_v11  ;;  %v811_v29 = vmul.f32 %v1868_v45, %v2574_v19 }
 0x2ce   :  { %1871 = vrsqrt.f32 %v781_v37  ;;  %v730_v48 = vpop.xlane.xlu1 %729  ;;  %1591 = vmatmul.mubr.msk.f32.vlgmr.msra.gmra.mrb[0].mxu1 %vm615_vm1, %v854_v40  ;;  %v833_v15 = vmul.f32 %v2712_v42, %v811_v29 }
 0x2cf   :  { %v1870_v50 = vpop.eup %1869  ;;  %v766_v13 = vmul.f32 0.015625, %v730_v48  ;;  %1021 = vmatprep.mubr.f32.mxu1 %v2163_v0 }
 0x2d0   :  { %v855_v51 = vadd.f32 %v2715_v22, %v833_v15  ;;  %v812_v60 = vmul.f32 %v1870_v50, %v2580_v32 }
 0x2d1   :  { %v782_v54 = vadd.f32 1e-05, %v766_v13 }
 0x2d2   :  { %1592 = vmatmul.mubr.msk.f32.gmra.mrb[2].mxu1 %vm615_vm1, %v855_v51  ;;  %v834_v33 = vmul.f32 %v2712_v42, %v812_v60 }
 0x2d3   :  { %1873 = vrsqrt.f32 %v782_v54  ;;  %1027 = vmatprep.mubr.f32.mxu1 %v2163_v0 }
 0x2d4   :  { %v733_v19 = vpop.xlane.xlu0 %732  ;;  %v856_v61 = vadd.f32 %v2715_v22, %v834_v33 }
 0x2d5   :  { %v767_v35 = vmul.f32 0.015625, %v733_v19 }
 0x2d6   :  { %1593 = vmatmul.mubr.msk.f32.gmra.mrb[4].mxu1 %vm615_vm1, %v856_v61 }
 0x2d7   :  { %v783_v38 = vadd.f32 1e-05, %v767_v35  ;;  %1033 = vmatprep.mubr.f32.mxu1 %v2163_v0 }
 0x2d8   :  { %v1872_v20 = vpop.eup %1871  ;;  %v736_v21 = vpop.xlane.xlu1 %735 }
 0x2d9   :  { %1875 = vrsqrt.f32 %v783_v38  ;;  %v768_v32 = vmul.f32 0.015625, %v736_v21  ;;  %v813_v55 = vmul.f32 %v1872_v20, %v2587_v56 }
 0x2db   :  { %v784_v39 = vadd.f32 1e-05, %v768_v32  ;;  %v835_v7 = vmul.f32 %v2712_v42, %v813_v55 }
 0x2dc   :  { %v739_v4 = vpop.xlane.xlu0 %738 }
 0x2dd   :  { %v1874_v31 = vpop.eup %1873  ;;  %1877 = vrsqrt.f32 %v784_v39  ;;  %v769_v34 = vmul.f32 0.015625, %v739_v4  ;;  %v857_v46 = vadd.f32 %v2715_v22, %v835_v7 }
 0x2de   :  { %v814_v16 = vmul.f32 %v1874_v31, %v2593_v23 }
 0x2df   :  { %v785_v62 = vadd.f32 1e-05, %v769_v34  ;;  %1594 = vmatmul.mubr.msk.f32.gmra.mrb[6].mxu1 %vm615_vm1, %v857_v46 }
 0x2e0   :  { %1039 = vmatprep.mubr.f32.mxu1 %v2163_v0  ;;  %v836_v11 = vmul.f32 %v2712_v42, %v814_v16 }
 0x2e1   :  { %1879 = vrsqrt.f32 %v785_v62  ;;  %v742_v56 = vpop.xlane.xlu1 %741 }
 0x2e2   :  { %v770_v45 = vmul.f32 0.015625, %v742_v56  ;;  %v858_v37 = vadd.f32 %v2715_v22, %v836_v11 }
 0x2e3   :  { %v1876_v40 = vpop.eup %1875 }
 0x2e4   :  { %v786_v29 = vadd.f32 1e-05, %v770_v45  ;;  %1595 = vmatmul.mubr.msk.f32.gmra.mrb[8].mxu1 %vm615_vm1, %v858_v37  ;;  %v815_v48 = vmul.f32 %v1876_v40, %v2608_v63 }
 0x2e5   :  { %1045 = vmatprep.mubr.f32.mxu1 %v2163_v0 }
 0x2e6   :  { %1881 = vrsqrt.f32 %v786_v29  ;;  %v837_v23 = vmul.f32 %v2712_v42, %v815_v48 }
 0x2e7   :  { %v1878_v15 = vpop.eup %1877  ;;  %v745_v50 = vpop.xlane.xlu0 %744 }
 0x2e8   :  { %v771_v13 = vmul.f32 0.015625, %v745_v50  ;;  %v859_v51 = vadd.f32 %v2715_v22, %v837_v23  ;;  %v816_v60 = vmul.f32 %v1878_v15, %v2625_v41 }
 0x2ea   :  { %v787_v54 = vadd.f32 1e-05, %v771_v13  ;;  %1596 = vmatmul.mubr.msk.f32.gmra.mrb[10].mxu1 %vm615_vm1, %v859_v51  ;;  %v838_v33 = vmul.f32 %v2712_v42, %v816_v60 }
 0x2eb   :  { %v1880_v19 = vpop.eup %1879  ;;  %v748_v61 = vpop.xlane.xlu1 %747  ;;  %1051 = vmatprep.mubr.f32.mxu1 %v2163_v0 }
 0x2ec   :  { %1883 = vrsqrt.f32 %v787_v54  ;;  %v772_v63 = vmul.f32 0.015625, %v748_v61  ;;  %v860_v35 = vadd.f32 %v2715_v22, %v838_v33  ;;  %v817_v38 = vmul.f32 %v1880_v19, %v2634_v18 }
 0x2ee   :  { %v788_v20 = vadd.f32 1e-05, %v772_v63  ;;  %1597 = vmatmul.mubr.msk.f32.gmra.mrb[12].mxu1 %vm615_vm1, %v860_v35  ;;  %v839_v41 = vmul.f32 %v2712_v42, %v817_v38 }
 0x2ef   :  { %1057 = vmatprep.mubr.f32.mxu1 %v2163_v0 }
 0x2f0   :  { %v1882_v21 = vpop.eup %1881  ;;  %1885 = vrsqrt.f32 %v788_v20  ;;  %v751_v32 = vpop.xlane.xlu0 %750  ;;  %v861_v55 = vadd.f32 %v2715_v22, %v839_v41 }
 0x2f1   :  { %v773_v39 = vmul.f32 0.015625, %v751_v32  ;;  %v818_v7 = vmul.f32 %v1882_v21, %v2650_v49 }
 0x2f2   :  { %1598 = vmatmul.mubr.msk.f32.gmra.mrb[14].mxu1 %vm615_vm1, %v861_v55 }
 0x2f3   :  { %v789_v4 = vadd.f32 1e-05, %v773_v39  ;;  %1063 = vmatprep.mubr.f32.mxu1 %v2163_v0  ;;  %v840_v18 = vmul.f32 %v2712_v42, %v818_v7 }
 0x2f5   :  { %1887 = vrsqrt.f32 %v789_v4  ;;  %v754_v31 = vpop.xlane.xlu1 %753  ;;  %v862_v34 = vadd.f32 %v2715_v22, %v840_v18 }
 0x2f6   :  { %v1884_v46 = vpop.eup %1883  ;;  %v774_v16 = vmul.f32 0.015625, %v754_v31  ;;  %v2797_v31 = vld [vmem:[%s3053_s6] sm:$0x3]  ;;  %s2165_s6 = smov [#allocation7]  }
 0x2f7   :  { %1599 = vmatmul.mubr.msk.f32.gmra.mrb[16].mxu1 %vm615_vm1, %v862_v34  ;;  %v819_v62 = vmul.f32 %v1884_v46, %v2671_v1  ;;  %v2802_v34 = vrot.slane %v2797_v31, %v75_v25 }
 0x2f8   :  { %v790_v11 = vadd.f32 1e-05, %v774_v16  ;;  %1069 = vmatprep.mubr.f32.mxu1 %v2163_v0 }
 0x2f9   :  { %v715_v49 = vpop.xlane.xlu1 %714  ;;  %v841_v56 = vmul.f32 %v2712_v42, %v819_v62 }
 0x2fa   :  { %v1886_v45 = vpop.eup %1885  ;;  %1889 = vrsqrt.f32 %v790_v11  ;;  %v757_v37 = vpop.xlane.xlu0 %756  ;;  %v761_v40 = vmul.f32 0.015625, %v715_v49 }
 0x2fb   :  { %v775_v29 = vmul.f32 0.015625, %v757_v37  ;;  %v863_v48 = vadd.f32 %v2715_v22, %v841_v56  ;;  %v820_v23 = vmul.f32 %v1886_v45, %v2676_v6 }
 0x2fc   :  { %v777_v15 = vadd.f32 1e-05, %v761_v40 }
 0x2fd   :  { %v791_v50 = vadd.f32 1e-05, %v775_v29  ;;  %1600 = vmatmul.mubr.msk.f32.gmra.mrb[18].mxu1 %vm615_vm1, %v863_v48  ;;  %v842_v1 = vmul.f32 %v2712_v42, %v820_v23 }
 0x2fe   :  { %1891 = vrsqrt.f32 %v777_v15  ;;  %1075 = vmatprep.mubr.f32.mxu1 %v2163_v0  ;;  %v760_v51 = vpop.xlane.xlu0 %759 }
 0x2ff   :  { %v1888_v13 = vpop.eup %1887  ;;  %1893 = vrsqrt.f32 %v791_v50  ;;  %v864_v60 = vadd.f32 %v2715_v22, %v842_v1  ;;  %v776_v54 = vmul.f32 0.015625, %v760_v51 }
 0x300   :  { %v821_v33 = vmul.f32 %v1888_v13, %v2683_v30 }
 0x301   :  { %1601 = vmatmul.mubr.msk.f32.gmra.mrb[20].mxu1 %vm615_vm1, %v864_v60  ;;  %v792_v6 = vadd.f32 1e-05, %v776_v54 }
 0x302   :  { %1081 = vmatprep.mubr.f32.mxu1 %v2163_v0  ;;  %v843_v19 = vmul.f32 %v2712_v42, %v821_v33 }
 0x303   :  { %1895 = vrsqrt.f32 %v792_v6 }
 0x304   :  { %v1890_v61 = vpop.eup %1889  ;;  %v865_v63 = vadd.f32 %v2715_v22, %v843_v19 }
 0x305   :  { %v822_v35 = vmul.f32 %v1890_v61, %v2689_v26 }
 0x306   :  { %1602 = vmatmul.mubr.msk.f32.gmra.mrb[22].mxu1 %vm615_vm1, %v865_v63 }
 0x307   :  { %1087 = vmatprep.mubr.f32.mxu1 %v2163_v0  ;;  %v844_v38 = vmul.f32 %v2712_v42, %v822_v35 }
 0x308   :  { %v1892_v30 = vpop.eup %1891 }
 0x309   :  { %v1894_v20 = vpop.eup %1893  ;;  %v809_v41 = vmul.f32 %v1892_v30, %v2694_v43  ;;  %v866_v21 = vadd.f32 %v2715_v22, %v844_v38 }
 0x30a   :  { %v823_v32 = vmul.f32 %v1894_v20, %v2698_v14 }
 0x30b   :  { %v831_v55 = vmul.f32 %v2712_v42, %v809_v41  ;;  %1603 = vmatmul.mubr.msk.f32.gmra.mrb[24].mxu1 %vm615_vm1, %v866_v21 }
 0x30c   :  { %1093 = vmatprep.mubr.f32.mxu1 %v2163_v0  ;;  %v845_v26 = vmul.f32 %v2712_v42, %v823_v32 }
 0x30d   :  { %v853_v39 = vadd.f32 %v2715_v22, %v831_v55  ;;  %v1896_v7 = vpop.eup %1895 }
 0x30e   :  { %v867_v4 = vadd.f32 %v2715_v22, %v845_v26  ;;  %v824_v43 = vmul.f32 %v1896_v7, %v2707_v53 }
 0x30f   :  { %1590 = vmatmul.mubr.msk.f32.vlgmr.msra.gmra.mrb[32].mxu0 %vm615_vm1, %v853_v39 }
 0x310   :  { %1604 = vmatmul.mubr.msk.f32.gmra.mrb[26].mxu1 %vm615_vm1, %v867_v4  ;;  %v846_v14 = vmul.f32 %v2712_v42, %v824_v43 }
 0x311   :  { %1099 = vmatprep.mubr.f32.mxu1 %v2163_v0 }
 0x312   :  { %v868_v18 = vadd.f32 %v2715_v22, %v846_v14 }
 0x314   :  { %1605 = vmatmul.mubr.msk.f32.gmra.mrb[28].mxu1 %vm615_vm1, %v868_v18 }
 0x3a1   :  { %v1017_v53 = vpop.f32.mrb[0].mxu1 }
 0x3a2   :  { %v2805_v46 = vadd.f32 %v1017_v53, %v2802_v34  ;;  %v2807_v0 = vpop.f32.mrb[1].mxu1 }
 0x3a4   :  { %1897 = vtanh.f32 %v2805_v46 }
 0x3a5   :  { %v1023_v42 = vpop.f32.mrb[2].mxu1 }
 0x3a6   :  { %v2810_v22 = vpop.f32.mrb[3].mxu1 }
 0x3a9   :  { %v1029_v16 = vpop.f32.mrb[4].mxu1 }
 0x3aa   :  { %v2812_v62 = vpop.f32.mrb[5].mxu1 }
 0x3ae   :  { %v1898_v11 = vpop.eup %1897 }
 0x3af   :  { %1332 = vrot.lane.b32.xlu0 %v1898_v11, %s2164_s0 }
 0x3b2   :  { %v1035_v49 = vpop.f32.mrb[6].mxu1 }
 0x3b3   :  { %v2816_v25 = vadd.f32 %v1035_v49, %v2802_v34  ;;  %v2818_v56 = vpop.f32.mrb[7].mxu1  ;;  %v2872_v49 = vadd.f32 %v1023_v42, %v2802_v34 }
 0x3b5   :  { %1899 = vtanh.f32 %v2816_v25 }
 0x3b7   :  { %v1041_v45 = vpop.f32.mrb[8].mxu1 }
 0x3b8   :  { %v2821_v37 = vpop.f32.mrb[9].mxu1 }
 0x3bd   :  { %v1047_v40 = vpop.f32.mrb[10].mxu1 }
 0x3be   :  { %v2824_v29 = vadd.f32 %v1047_v40, %v2802_v34  ;;  %v2826_v48 = vpop.f32.mrb[11].mxu1  ;;  %v2879_v40 = vadd.f32 %v1029_v16, %v2802_v34 }
 0x3bf   :  { %v1900_v23 = vpop.eup %1899 }
 0x3c0   :  { %1901 = vtanh.f32 %v2824_v29  ;;  %1338 = vrot.lane.b32.xlu0 %v1900_v23, %s2164_s0  ;;  %v2883_v23 = vadd.f32 %v1041_v45, %v2802_v34 }
 0x3c1   :  { %v1053_v15 = vpop.f32.mrb[12].mxu1 }
 0x3c2   :  { %v2830_v50 = vpop.f32.mrb[13].mxu1  ;;  %v2888_v42 = vadd.f32 %v1053_v15, %v2802_v34 }
 0x3c5   :  { %v1059_v1 = vpop.f32.mrb[14].mxu1 }
 0x3c6   :  { %v2832_v13 = vpop.f32.mrb[15].mxu1  ;;  %v2835_v51 = vadd.f32 %v1059_v1, %v2802_v34 }
 0x3c8   :  { %1903 = vtanh.f32 %v2835_v51 }
 0x3ca   :  { %v1902_v60 = vpop.eup %1901  ;;  %v1065_v54 = vpop.f32.mrb[16].mxu1 }
 0x3cb   :  { %v2837_v33 = vpop.f32.mrb[17].mxu1  ;;  %1342 = vrot.lane.b32.xlu0 %v1902_v60, %s2164_s0  ;;  %v2894_v16 = vadd.f32 %v1065_v54, %v2802_v34  ;;  %v2910_v54 = vrot.slane %v2797_v31, %v79_v27 }
 0x3d0   :  { %v1071_v6 = vpop.f32.mrb[18].mxu1 }
 0x3d1   :  { %v2842_v19 = vadd.f32 %v1071_v6, %v2802_v34  ;;  %v2844_v61 = vpop.f32.mrb[19].mxu1 }
 0x3d2   :  { %v1904_v38 = vpop.eup %1903 }
 0x3d3   :  { %1905 = vtanh.f32 %v2842_v19  ;;  %1346 = vrot.lane.b32.xlu0 %v1904_v38, %s2164_s0 }
 0x3d4   :  { %v1077_v63 = vpop.f32.mrb[20].mxu1 }
 0x3d5   :  { %v2847_v35 = vpop.f32.mrb[21].mxu1  ;;  %v2899_v38 = vadd.f32 %v1077_v63, %v2802_v34  ;;  %v1020_v63 = vadd.f32 %v2807_v0, %v2910_v54 }
 0x3d7   :  { %v1623_v24 = vmul.f32 -1.442695, %v1020_v63 }
 0x3d9   :  { %v1083_v30 = vpop.f32.mrb[22].mxu1 }
 0x3da   :  { %v2850_v20 = vpop.f32.mrb[23].mxu1  ;;  %v2853_v41 = vadd.f32 %v1083_v30, %v2802_v34  ;;  %v1607_v30 = vmul.f32 -1.442695, %v2805_v46 }
 0x3dc   :  { %1907 = vtanh.f32 %v2853_v41 }
 0x3dd   :  { %v1906_v21 = vpop.eup %1905 }
 0x3de   :  { %v1089_v32 = vpop.f32.mrb[24].mxu1  ;;  %1350 = vrot.lane.b32.xlu0 %v1906_v21, %s2164_s0 }
 0x3df   :  { %v2855_v55 = vpop.f32.mrb[25].mxu1  ;;  %v2905_v21 = vadd.f32 %v1089_v32, %v2802_v34 }
 0x3e2   :  { %v1011_v26 = vpop.f32.mrb[32].mxu0 }
 0x3e3   :  { %v1095_v39 = vpop.f32.mrb[26].mxu1  ;;  %v2859_v7 = vpop.f32.mrb[33].mxu0  ;;  %v2864_v43 = vadd.f32 %v1011_v26, %v2802_v34 }
 0x3e4   :  { %v2861_v4 = vpop.f32.mrb[27].mxu1  ;;  %v2869_v53 = vadd.f32 %v1095_v39, %v2802_v34 }
 0x3e5   :  { %1909 = vtanh.f32 %v2864_v43 }
 0x3e6   :  { %v1908_v11 = vpop.eup %1907  ;;  %1911 = vtanh.f32 %v2869_v53 }
 0x3e7   :  { %v1101_v14 = vpop.f32.mrb[28].mxu1  ;;  %1354 = vrot.lane.b32.xlu0 %v1908_v11, %s2164_s0  ;;  %1913 = vtanh.f32 %v2872_v49 }
 0x3e8   :  { %v2866_v18 = vpop.f32.mrb[29].mxu1  ;;  %1915 = vtanh.f32 %v2879_v40  ;;  %v2915_v46 = vadd.f32 %v1101_v14, %v2802_v34  ;;  %v1610_v34 = vmul.f32 -1.442695, %v2816_v25 }
 0x3e9   :  { %1917 = vtanh.f32 %v2883_v23 }
 0x3ea   :  { %1919 = vtanh.f32 %v2888_v42 }
 0x3eb   :  { %1921 = vtanh.f32 %v2894_v16 }
 0x3ec   :  { %1923 = vtanh.f32 %v2899_v38 }
 0x3ed   :  { %1925 = vpow2.f32 %v1607_v30 }
 0x3ee   :  { %1927 = vtanh.f32 %v2905_v21 }
 0x3ef   :  { %v1910_v1 = vpop.eup %1909  ;;  %1929 = vtanh.f32 %v2915_v46 }
 0x3f0   :  { %1330 = vrot.lane.b32.xlu1 %v1910_v1, %s2164_s0  ;;  %v1912_v60 = vpop.eup %1911  ;;  %1931 = vpow2.f32 %v1623_v24  ;;  %v1038_v1 = vadd.f32 %v2818_v56, %v2910_v54  ;;  %v1614_v56 = vmul.f32 -1.442695, %v2835_v51 }
 0x3f1   :  { %v1914_v6 = vpop.eup %1913  ;;  %1358 = vrot.lane.b32.xlu0 %v1912_v60, %s2164_s0 }
 0x3f2   :  { %v1916_v45 = vpop.eup %1915 }
 0x3f3   :  { %v1918_v15 = vpop.eup %1917 }
 0x3f4   :  { %1334 = vrot.lane.b32.xlu1 %v1914_v6, %s2164_s0  ;;  %v1920_v26 = vpop.eup %1919  ;;  %v1612_v6 = vmul.f32 -1.442695, %v2824_v29 }
 0x3f5   :  { %v1922_v39 = vpop.eup %1921 }
 0x3f6   :  { %v1924_v27 = vpop.eup %1923 }
 0x3f7   :  { %v1926_v31 = vpop.eup %1925 }
 0x3f8   :  { %1336 = vrot.lane.b32.xlu1 %v1916_v45, %s2164_s0  ;;  %v1928_v32 = vpop.eup %1927  ;;  %v1155_v11 = vadd.f32 1.0, %v1926_v31  ;;  %v1626_v45 = vmul.f32 -1.442695, %v1038_v1  ;;  %v1062_v1 = vadd.f32 %v2832_v13, %v2910_v54 }
 0x3f9   :  { %v1930_v14 = vpop.eup %1929 }
 0x3fa   :  { %1933 = vrcp.f32 %v1155_v11  ;;  %v1932_v0 = vpop.eup %1931 }
 0x3fb   :  { %1935 = vpow2.f32 %v1610_v34  ;;  %v1267_v60 = vadd.f32 1.0, %v1932_v0 }
 0x3fc   :  { %1340 = vrot.lane.b32.xlu1 %v1918_v15, %s2164_s0 }
 0x3fd   :  { %1937 = vrcp.f32 %v1267_v60 }
 0x3fe   :  { %1939 = vpow2.f32 %v1612_v6  ;;  %v1630_v6 = vmul.f32 -1.442695, %v1062_v1 }
 0x3ff   :  { %1941 = vpow2.f32 %v1626_v45 }
 0x400   :  { %1344 = vrot.lane.b32.xlu1 %v1920_v26, %s2164_s0 }
 0x404   :  { %1348 = vrot.lane.b32.xlu1 %v1922_v39, %s2164_s0  ;;  %v1934_v15 = vpop.eup %1933  ;;  %v1050_v39 = vadd.f32 %v2826_v48, %v2910_v54  ;;  %v1616_v48 = vmul.f32 -1.442695, %v2842_v19  ;;  %v1618_v19 = vmul.f32 -1.442695, %v2853_v41  ;;  %v1086_v41 = vadd.f32 %v2850_v20, %v2910_v54 }
 0x405   :  { %v1936_v30 = vpop.eup %1935  ;;  %v1609_v20 = vmul.f32 -1.442695, %v2879_v40  ;;  %v1613_v40 = vmul.f32 -1.442695, %v2888_v42 }
 0x406   :  { %v1158_v25 = vadd.f32 1.0, %v1936_v30  ;;  %v1628_v24 = vmul.f32 -1.442695, %v1050_v39  ;;  %v1074_v30 = vadd.f32 %v2844_v61, %v2910_v54  ;;  %v1026_v61 = vadd.f32 %v2810_v22, %v2910_v54 }
 0x408   :  { %1352 = vrot.lane.b32.xlu1 %v1924_v27, %s2164_s0  ;;  %v1938_v27 = vpop.eup %1937  ;;  %v1632_v39 = vmul.f32 -1.442695, %v1074_v30 }
 0x409   :  { %v1940_v31 = vpop.eup %1939 }
 0x40a   :  { %v1942_v29 = vpop.eup %1941  ;;  %v1160_v11 = vadd.f32 1.0, %v1940_v31 }
 0x40c   :  { %1356 = vrot.lane.b32.xlu1 %v1928_v32, %s2164_s0 }
 0x410   :  { %1360 = vrot.lane.b32.xlu1 %v1930_v14, %s2164_s0  ;;  %v1270_v14 = vadd.f32 1.0, %v1942_v29 }
 0x421   :  { %v1333_v26 = vpop.permute.xlu0 %1332 }
 0x422   :  { %v1379_v63 = vmul.f32 %v1934_v15, %v1333_v26 }
 0x424   :  { %1943 = vtanh.f32 %v1379_v63 }
 0x425   :  { %1945 = vrcp.f32 %v1158_v25 }
 0x426   :  { %1947 = vpow2.f32 %v1628_v24 }
 0x427   :  { %1949 = vpow2.f32 %v1614_v56 }
 0x428   :  { %1951 = vrcp.f32 %v1160_v11 }
 0x429   :  { %1953 = vrcp.f32 %v1270_v14  ;;  %v1624_v14 = vmul.f32 -1.442695, %v1026_v61  ;;  %v1098_v61 = vadd.f32 %v2861_v4, %v2910_v54  ;;  %v1044_v4 = vadd.f32 %v2821_v37, %v2910_v54 }
 0x42a   :  { %v1068_v37 = vadd.f32 %v2837_v33, %v2910_v54 }
 0x42e   :  { %v1944_v32 = vpop.eup %1943 }
 0x42f   :  { %v1411_v34 = vmul.f32 %v1944_v32, %v1938_v27  ;;  %v1946_v0 = vpop.eup %1945 }
 0x430   :  { %v1948_v45 = vpop.eup %1947 }
 0x431   :  { %1444 = vrot.lane.b32.xlu1 %v1411_v34, %s2164_s0  ;;  %v1950_v15 = vpop.eup %1949  ;;  %v1272_v26 = vadd.f32 1.0, %v1948_v45  ;;  %v1608_v34 = vmul.f32 -1.442695, %v2872_v49 }
 0x432   :  { %v1339_v60 = vpop.permute.xlu0 %1338  ;;  %v1162_v63 = vadd.f32 1.0, %v1950_v15  ;;  %v1952_v25 = vpop.eup %1951  ;;  %v1620_v15 = vmul.f32 -1.442695, %v2869_v53  ;;  %v1014_v53 = vadd.f32 %v2859_v7, %v2910_v54 }
 0x433   :  { %v1382_v51 = vmul.f32 %v1946_v0, %v1339_v60  ;;  %v1954_v24 = vpop.eup %1953 }
 0x435   :  { %1955 = vtanh.f32 %v1382_v51 }
 0x436   :  { %1957 = vpow2.f32 %v1616_v48  ;;  %v1606_v48 = vmul.f32 -1.442695, %v2864_v43 }
 0x437   :  { %1959 = vpow2.f32 %v1630_v6  ;;  %v1634_v6 = vmul.f32 -1.442695, %v1086_v41  ;;  %v1636_v41 = vmul.f32 -1.442695, %v1098_v61 }
 0x438   :  { %1961 = vrcp.f32 %v1272_v26 }
 0x439   :  { %1963 = vrcp.f32 %v1162_v63 }
 0x43d   :  { %v1343_v13 = vpop.permute.xlu0 %1342 }
 0x43e   :  { %v1384_v56 = vmul.f32 %v1952_v25, %v1343_v13  ;;  %v1032_v25 = vadd.f32 %v2812_v62, %v2910_v54  ;;  %v1611_v13 = vmul.f32 -1.442695, %v2883_v23 }
 0x43f   :  { %v1956_v27 = vpop.eup %1955 }
 0x440   :  { %v1958_v31 = vpop.eup %1957  ;;  %1965 = vtanh.f32 %v1384_v56  ;;  %v2938_v29 = vmul.f32 %v1956_v27, %v1954_v24 }
 0x441   :  { %1967 = vpow2.f32 %v1632_v39  ;;  %v1164_v32 = vadd.f32 1.0, %v1958_v31  ;;  %v1960_v11 = vpop.eup %1959  ;;  %v1625_v31 = vmul.f32 -1.442695, %v1032_v25 }
 0x442   :  { %1969 = vpow2.f32 %v1618_v19  ;;  %v1274_v0 = vadd.f32 1.0, %v1960_v11  ;;  %v1962_v1 = vpop.eup %1961 }
 0x443   :  { %1971 = vrcp.f32 %v1164_v32  ;;  %v1964_v60 = vpop.eup %1963  ;;  %v1622_v32 = vmul.f32 -1.442695, %v1014_v53 }
 0x444   :  { %1973 = vpow2.f32 %v1608_v34 }
 0x445   :  { %1975 = vpow2.f32 %v1624_v14  ;;  %v1347_v22 = vpop.permute.xlu0 %1346 }
 0x446   :  { %1977 = vrcp.f32 %v1274_v0  ;;  %v1386_v49 = vmul.f32 %v1964_v60, %v1347_v22  ;;  %v1056_v22 = vadd.f32 %v2830_v50, %v2910_v54 }
 0x447   :  { %1979 = vpow2.f32 %v1606_v48 }
 0x448   :  { %1981 = vtanh.f32 %v1386_v49 }
 0x449   :  { %1983 = vpow2.f32 %v1634_v6 }
 0x44a   :  { %v1966_v51 = vpop.eup %1965  ;;  %1985 = vpow2.f32 %v1620_v15 }
 0x44b   :  { %v1968_v45 = vpop.eup %1967  ;;  %v2947_v30 = vmul.f32 %v1966_v51, %v1962_v1  ;;  %1987 = vpow2.f32 %v1609_v20  ;;  %v1615_v1 = vmul.f32 -1.442695, %v2894_v16  ;;  %v1627_v16 = vmul.f32 -1.442695, %v1044_v4 }
 0x44c   :  { %v1970_v26 = vpop.eup %1969  ;;  %v1276_v63 = vadd.f32 1.0, %v1968_v45 }
 0x44d   :  { %v1166_v43 = vadd.f32 1.0, %v1970_v26  ;;  %v1972_v39 = vpop.eup %1971 }
 0x44e   :  { %1989 = vrcp.f32 %v1276_v63  ;;  %v1974_v56 = vpop.eup %1973 }
 0x44f   :  { %1991 = vrcp.f32 %v1166_v43  ;;  %v1976_v27 = vpop.eup %1975  ;;  %v1156_v11 = vadd.f32 1.0, %v1974_v56  ;;  %v1631_v56 = vmul.f32 -1.442695, %v1068_v37 }
 0x450   :  { %v1351_v24 = vpop.permute.xlu0 %1350  ;;  %v1978_v62 = vpop.eup %1977  ;;  %v1268_v7 = vadd.f32 1.0, %v1976_v27 }
 0x451   :  { %v1388_v19 = vmul.f32 %v1972_v39, %v1351_v24  ;;  %v1980_v23 = vpop.eup %1979  ;;  %v1629_v39 = vmul.f32 -1.442695, %v1056_v22 }
 0x452   :  { %v1982_v34 = vpop.eup %1981  ;;  %v1154_v48 = vadd.f32 1.0, %v1980_v23  ;;  %v1621_v23 = vmul.f32 -1.442695, %v2915_v46 }
 0x453   :  { %1993 = vtanh.f32 %v1388_v19  ;;  %v1984_v14 = vpop.eup %1983  ;;  %v2958_v0 = vmul.f32 %v1982_v34, %v1978_v62 }
 0x454   :  { %1995 = vpow2.f32 %v1611_v13  ;;  %v1986_v42 = vpop.eup %1985  ;;  %v1278_v51 = vadd.f32 1.0, %v1984_v14  ;;  %v1617_v13 = vmul.f32 -1.442695, %v2899_v38 }
 0x455   :  { %1997 = vpow2.f32 %v1613_v40  ;;  %v1988_v60 = vpop.eup %1987  ;;  %v1168_v45 = vadd.f32 1.0, %v1986_v42 }
 0x456   :  { %1999 = vpow2.f32 %v1625_v31  ;;  %v1157_v26 = vadd.f32 1.0, %v1988_v60  ;;  %v1619_v31 = vmul.f32 -1.442695, %v2905_v21 }
 0x457   :  { %2001 = vpow2.f32 %v1622_v32 }
 0x458   :  { %2003 = vrcp.f32 %v1156_v11  ;;  %v1990_v6 = vpop.eup %1989 }
 0x459   :  { %2005 = vrcp.f32 %v1268_v7  ;;  %v1992_v15 = vpop.eup %1991  ;;  %v1355_v20 = vpop.permute.xlu0 %1354  ;;  %v1080_v7 = vadd.f32 %v2847_v35, %v2910_v54  ;;  %v1092_v35 = vadd.f32 %v2855_v55, %v2910_v54 }
 0x45a   :  { %2007 = vpow2.f32 %v1636_v41  ;;  %v1390_v43 = vmul.f32 %v1992_v15, %v1355_v20 }
 0x45b   :  { %2009 = vpow2.f32 %v1615_v1  ;;  %v1633_v22 = vmul.f32 -1.442695, %v1080_v7 }
 0x45c   :  { %2011 = vrcp.f32 %v1154_v48 }
 0x45d   :  { %v1994_v49 = vpop.eup %1993  ;;  %2013 = vrcp.f32 %v1278_v51 }
 0x45e   :  { %v1996_v63 = vpop.eup %1995  ;;  %v2967_v25 = vmul.f32 %v1994_v49, %v1990_v6  ;;  %2015 = vrcp.f32 %v1168_v45 }
 0x45f   :  { %v1998_v50 = vpop.eup %1997  ;;  %2017 = vtanh.f32 %v1390_v43  ;;  %v1159_v24 = vadd.f32 1.0, %v1996_v63  ;;  %v1635_v43 = vmul.f32 -1.442695, %v1092_v35 }
 0x460   :  { %v2000_v53 = vpop.eup %1999  ;;  %2019 = vrcp.f32 %v1157_v26  ;;  %v1161_v27 = vadd.f32 1.0, %v1998_v50 }
 0x461   :  { %v2002_v19 = vpop.eup %2001  ;;  %2021 = vpow2.f32 %v1627_v16  ;;  %v1269_v48 = vadd.f32 1.0, %v2000_v53 }
 0x462   :  { %v2004_v40 = vpop.eup %2003  ;;  %2023 = vpow2.f32 %v1629_v39  ;;  %v1266_v62 = vadd.f32 1.0, %v2002_v19  ;;  %v1331_v11 = vpop.permute.xlu1 %1330  ;;  %v1104_v39 = vadd.f32 %v2866_v18, %v2910_v54 }
 0x463   :  { %v2970_v33 = vpop.eup %2005  ;;  %2025 = vpow2.f32 %v1617_v13  ;;  %v1359_v1 = vpop.permute.xlu0 %1358 }
 0x464   :  { %v2008_v61 = vpop.eup %2007  ;;  %2027 = vrcp.f32 %v1159_v24 }
 0x465   :  { %v2010_v32 = vpop.eup %2009  ;;  %2029 = vpow2.f32 %v1631_v56  ;;  %v1280_v14 = vadd.f32 1.0, %v2008_v61 }
 0x466   :  { %v2012_v38 = vpop.eup %2011  ;;  %2031 = vrcp.f32 %v1161_v27  ;;  %v1335_v51 = vpop.permute.xlu1 %1334  ;;  %v1163_v49 = vadd.f32 1.0, %v2010_v32  ;;  %v1637_v27 = vmul.f32 -1.442695, %v1104_v39 }
 0x467   :  { %v2014_v34 = vpop.eup %2013  ;;  %2033 = vpow2.f32 %v1619_v31  ;;  %v1378_v41 = vmul.f32 %v2012_v38, %v1331_v11  ;;  %v1380_v45 = vmul.f32 %v2004_v40, %v1335_v51 }
 0x468   :  { %v2016_v42 = vpop.eup %2015  ;;  %2035 = vrcp.f32 %v1266_v62 }
 0x469   :  { %v2018_v21 = vpop.eup %2017  ;;  %2037 = vtanh.f32 %v1378_v41  ;;  %v1392_v60 = vmul.f32 %v2016_v42, %v1359_v1 }
 0x46a   :  { %v2020_v4 = vpop.eup %2019  ;;  %2039 = vpow2.f32 %v1621_v23  ;;  %v2976_v6 = vmul.f32 %v2018_v21, %v2014_v34  ;;  %v1337_v63 = vpop.permute.xlu1 %1336 }
 0x46b   :  { %v2022_v46 = vpop.eup %2021  ;;  %2041 = vrcp.f32 %v1280_v14  ;;  %v1381_v50 = vmul.f32 %v2020_v4, %v1337_v63 }
 0x46c   :  { %v2024_v15 = vpop.eup %2023  ;;  %2043 = vtanh.f32 %v1392_v60  ;;  %v1271_v20 = vadd.f32 1.0, %v2022_v46 }
 0x46d   :  { %v2026_v26 = vpop.eup %2025  ;;  %2045 = vtanh.f32 %v1380_v45  ;;  %v1273_v19 = vadd.f32 1.0, %v2024_v15 }
 0x46e   :  { %v2028_v16 = vpop.eup %2027  ;;  %2047 = vrcp.f32 %v1269_v48  ;;  %v1165_v55 = vadd.f32 1.0, %v2026_v26  ;;  %v1341_v56 = vpop.permute.xlu1 %1340 }
 0x46f   :  { %v2030_v37 = vpop.eup %2029  ;;  %2049 = vpow2.f32 %v1633_v22  ;;  %v1383_v31 = vmul.f32 %v2028_v16, %v1341_v56 }
 0x470   :  { %v2032_v13 = vpop.eup %2031  ;;  %2051 = vrcp.f32 %v1163_v49  ;;  %v1275_v11 = vadd.f32 1.0, %v2030_v37 }
 0x471   :  { %v2034_v53 = vpop.eup %2033  ;;  %2053 = vtanh.f32 %v1381_v50 }
 0x472   :  { %v2036_v24 = vpop.eup %2035  ;;  %2055 = vrcp.f32 %v1271_v20  ;;  %v1167_v62 = vadd.f32 1.0, %v2034_v53  ;;  %v1345_v54 = vpop.permute.xlu1 %1344 }
 0x473   :  { %v2038_v40 = vpop.eup %2037  ;;  %2057 = vpow2.f32 %v1635_v43  ;;  %v1385_v34 = vmul.f32 %v2032_v13, %v1345_v54 }
 0x474   :  { %v2040_v61 = vpop.eup %2039  ;;  %2059 = vrcp.f32 %v1165_v55  ;;  %v1410_v32 = vmul.f32 %v2038_v40, %v2036_v24 }
 0x475   :  { %v2042_v38 = vpop.eup %2041  ;;  %2061 = vtanh.f32 %v1383_v31  ;;  %v1169_v41 = vadd.f32 1.0, %v2040_v61 }
 0x476   :  { %v2044_v18 = vpop.eup %2043  ;;  %2063 = vrcp.f32 %v1273_v19  ;;  %1442 = vrot.lane.b32.xlu0 %v1410_v32, %s2164_s0  ;;  %v1349_v4 = vpop.permute.xlu1 %1348 }
 0x477   :  { %v2046_v23 = vpop.eup %2045  ;;  %2065 = vpow2.f32 %v1637_v27  ;;  %v1424_v7 = vmul.f32 %v2044_v18, %v2042_v38 }
 0x478   :  { %v2048_v14 = vpop.eup %2047  ;;  %2067 = vrcp.f32 %v1167_v62  ;;  %v1412_v42 = vmul.f32 %v2046_v23, %v2970_v33 }
 0x479   :  { %v2050_v21 = vpop.eup %2049  ;;  %2069 = vtanh.f32 %v1385_v34 }
 0x47a   :  { %v2052_v1 = vpop.eup %2051  ;;  %1446 = vrot.lane.b32.xlu0 %v1412_v42, %s2164_s0  ;;  %2071 = vrcp.f32 %v1275_v11  ;;  %v1277_v46 = vadd.f32 1.0, %v2050_v21  ;;  %v1353_v15 = vpop.permute.xlu1 %1352 }
 0x47b   :  { %v2054_v48 = vpop.eup %2053  ;;  %v1387_v60 = vmul.f32 %v2052_v1, %v1349_v4  ;;  %2073 = vrcp.f32 %v1169_v41 }
 0x47c   :  { %v2056_v51 = vpop.eup %2055  ;;  %v1413_v22 = vmul.f32 %v2054_v48, %v2048_v14 }
 0x47d   :  { %v2058_v35 = vpop.eup %2057  ;;  %2075 = vtanh.f32 %v1387_v60 }
 0x47e   :  { %v2060_v45 = vpop.eup %2059  ;;  %1448 = vrot.lane.b32.xlu1 %v1413_v22, %s2164_s0  ;;  %1450 = vrot.lane.b32.xlu0 %v2938_v29, %s2164_s0  ;;  %2077 = vrcp.f32 %v1277_v46  ;;  %v1279_v16 = vadd.f32 1.0, %v2058_v35  ;;  %v1357_v43 = vpop.permute.xlu1 %1356 }
 0x47f   :  { %v2062_v33 = vpop.eup %2061  ;;  %v1389_v49 = vmul.f32 %v2060_v45, %v1353_v15 }
 0x480   :  { %v2064_v26 = vpop.eup %2063  ;;  %v1415_v20 = vmul.f32 %v2062_v33, %v2056_v51 }
 0x481   :  { %v2066_v63 = vpop.eup %2065  ;;  %2079 = vtanh.f32 %v1389_v49 }
 0x482   :  { %v2068_v37 = vpop.eup %2067  ;;  %1452 = vrot.lane.b32.xlu1 %v1415_v20, %s2164_s0  ;;  %1454 = vrot.lane.b32.xlu0 %v2947_v30, %s2164_s0  ;;  %2081 = vrcp.f32 %v1279_v16  ;;  %v1281_v13 = vadd.f32 1.0, %v2066_v63  ;;  %v1361_v24 = vpop.permute.xlu1 %1360 }
 0x483   :  { %v2070_v39 = vpop.eup %2069  ;;  %v1391_v50 = vmul.f32 %v2068_v37, %v1357_v43 }
 0x484   :  { %v1417_v29 = vmul.f32 %v2070_v39, %v2064_v26  ;;  %v2072_v55 = vpop.eup %2071 }
 0x485   :  { %2083 = vtanh.f32 %v1391_v50  ;;  %v2074_v53 = vpop.eup %2073 }
 0x486   :  { %1456 = vrot.lane.b32.xlu1 %v1417_v29, %s2164_s0  ;;  %1458 = vrot.lane.b32.xlu0 %v2958_v0, %s2164_s0  ;;  %v1393_v56 = vmul.f32 %v2074_v53, %v1361_v24  ;;  %2085 = vrcp.f32 %v1281_v13 }
 0x487   :  { %v2076_v19 = vpop.eup %2075 }
 0x488   :  { %v1419_v40 = vmul.f32 %v2076_v19, %v2072_v55  ;;  %2087 = vtanh.f32 %v1393_v56  ;;  %v2078_v30 = vpop.eup %2077 }
 0x48a   :  { %1460 = vrot.lane.b32.xlu1 %v1419_v40, %s2164_s0  ;;  %1462 = vrot.lane.b32.xlu0 %v2967_v25, %s2164_s0 }
 0x48b   :  { %v2080_v27 = vpop.eup %2079 }
 0x48c   :  { %v1421_v31 = vmul.f32 %v2080_v27, %v2078_v30  ;;  %v2082_v61 = vpop.eup %2081 }
 0x48e   :  { %1464 = vrot.lane.b32.xlu1 %v1421_v31, %s2164_s0  ;;  %1466 = vrot.lane.b32.xlu0 %v2976_v6, %s2164_s0 }
 0x48f   :  { %v2084_v0 = vpop.eup %2083 }
 0x490   :  { %v1423_v62 = vmul.f32 %v2084_v0, %v2082_v61  ;;  %v2086_v32 = vpop.eup %2085 }
 0x492   :  { %1468 = vrot.lane.b32.xlu1 %v1423_v62, %s2164_s0  ;;  %1470 = vrot.lane.b32.xlu0 %v1424_v7, %s2164_s0  ;;  %v2088_v38 = vpop.eup %2087 }
 0x493   :  { %v1425_v18 = vmul.f32 %v2088_v38, %v2086_v32 }
 0x496   :  { %1472 = vrot.lane.b32.xlu1 %v1425_v18, %s2164_s0  ;;  %s1527_s0 = sshll.u32 %s2165_s6, 4  ;;  %s1528_s0 = int_to_ptr.vmem [resolvable:$true] %s1527_s0 }
 0x497   :  { %s2133_s22 = scalar_lea.vmem %s1528_s0, 2048  ;;  %p2138_p3 = scmp.lt.s32.totalorder %s1528_s0, %s1528_s0 }
 0x498   :  { %p2134_p2 = scmp.ne.s32.totalorder %s1528_s0, %s2133_s22  ;;  %p2139_p4 = scmp.lt.s32.totalorder %s2133_s22, %s2133_s22 }
 0x49a   :  { %p2140_p5 = por %p2139_p4, %p2138_p3 }
 0x49c   :  { %p2141_p6 = pnand %p2140_p5, %p2134_p2 }
 0x4a3   :  { %v1445_v25 = vpop.permute.xlu1 %1444 }
 0x4a4   :  { %v1491_v54 = vsel %vm615_vm1, %v2482_v8, %v1445_v25 }
 0x4a5   :  { %1507 = vst [vmem:[#allocation7 + $0x8] sm:$0xff] %v1491_v54 }
 0x4e8   :  { %v1443_v23 = vpop.permute.xlu0 %1442 }
 0x4e9   :  { %v1490_v6 = vsel %vm615_vm1, %v2556_v3, %v1443_v23 }
 0x4ea   :  { %1506 = vst [vmem:[#allocation7] sm:$0xff] %v1490_v6 }
 0x4ec   :  { %v1447_v11 = vpop.permute.xlu0 %1446 }
 0x4ed   :  { %v1492_v34 = vsel %vm615_vm1, %v2489_v52, %v1447_v11 }
 0x4ee   :  { %1508 = vst [vmem:[#allocation7 + $0x10] sm:$0xff] %v1492_v34 }
 0x4f0   :  { %v1449_v7 = vpop.permute.xlu1 %1448  ;;  %v1451_v14 = vpop.permute.xlu0 %1450 }
 0x4f1   :  { %v1493_v41 = vsel %vm615_vm1, %v2496_v28, %v1449_v7  ;;  %v1494_v42 = vsel %vm615_vm1, %v2506_v36, %v1451_v14 }
 0x4f2   :  { %1509 = vst [vmem:[#allocation7 + $0x18] sm:$0xff] %v1493_v41  ;;  %1510 = vst [vmem:[#allocation7 + $0x20] sm:$0xff] %v1494_v42 }
 0x4f4   :  { %v1453_v8 = vpop.permute.xlu1 %1452  ;;  %v1455_v21 = vpop.permute.xlu0 %1454 }
 0x4f5   :  { %v1495_v3 = vsel %vm615_vm1, %v2513_v10, %v1453_v8  ;;  %v1496_v1 = vsel %vm615_vm1, %v2520_v44, %v1455_v21 }
 0x4f6   :  { %1511 = vst [vmem:[#allocation7 + $0x28] sm:$0xff] %v1495_v3  ;;  %1512 = vst [vmem:[#allocation7 + $0x30] sm:$0xff] %v1496_v1 }
 0x4f8   :  { %v1457_v52 = vpop.permute.xlu1 %1456  ;;  %v1459_v4 = vpop.permute.xlu0 %1458 }
 0x4f9   :  { %v1497_v28 = vsel %vm615_vm1, %v2526_v57, %v1457_v52  ;;  %v1498_v36 = vsel %vm615_vm1, %v2531_v5, %v1459_v4 }
 0x4fa   :  { %1513 = vst [vmem:[#allocation7 + $0x38] sm:$0xff] %v1497_v28  ;;  %1514 = vst [vmem:[#allocation7 + $0x40] sm:$0xff] %v1498_v36 }
 0x4fc   :  { %v1461_v48 = vpop.permute.xlu1 %1460  ;;  %v1463_v60 = vpop.permute.xlu0 %1462 }
 0x4fd   :  { %v1499_v10 = vsel %vm615_vm1, %v2536_v12, %v1461_v48  ;;  %v1500_v44 = vsel %vm615_vm1, %v2540_v17, %v1463_v60 }
 0x4fe   :  { %1515 = vst [vmem:[#allocation7 + $0x48] sm:$0xff] %v1499_v10  ;;  %1516 = vst [vmem:[#allocation7 + $0x50] sm:$0xff] %v1500_v44 }
 0x500   :  { %v1465_v51 = vpop.permute.xlu1 %1464  ;;  %v1467_v46 = vpop.permute.xlu0 %1466 }
 0x501   :  { %v1501_v57 = vsel %vm615_vm1, %v2544_v47, %v1465_v51  ;;  %v1502_v5 = vsel %vm615_vm1, %v2548_v59, %v1467_v46 }
 0x502   :  { %1517 = vst [vmem:[#allocation7 + $0x58] sm:$0xff] %v1501_v57  ;;  %1518 = vst [vmem:[#allocation7 + $0x60] sm:$0xff] %v1502_v5 }
 0x504   :  { %v1469_v22 = vpop.permute.xlu1 %1468  ;;  %v1471_v35 = vpop.permute.xlu0 %1470 }
 0x505   :  { %v1503_v12 = vsel %vm615_vm1, %v2552_v2, %v1469_v22  ;;  %v1504_v17 = vsel %vm615_vm1, %v2558_v58, %v1471_v35 }
 0x506   :  { %1519 = vst [vmem:[#allocation7 + $0x68] sm:$0xff] %v1503_v12  ;;  %1520 = vst [vmem:[#allocation7 + $0x70] sm:$0xff] %v1504_v17 }
 0x508   :  { %v1473_v45 = vpop.permute.xlu1 %1472 }
 0x509   :  { %v1505_v47 = vsel %vm615_vm1, %v2564_v9, %v1473_v45 }
 0x50a   :  { %1521 = vst [vmem:[#allocation7 + $0x78] sm:$0xff] %v1505_v47 }
 0x50b   :  { %2144 = shalt.err (!%p2141_p6)
}
 0x50c   :  { %s2145_s3 = scalar_lea.hbm %s3054_s7, 2048 }
 0x50d   :  { %p2146_p7 = scmp.ne.s32.totalorder %s3054_s7, %s2145_s3  ;;  %p2149_p8 = scmp.lt.u32.totalorder %s2145_s3, %s3054_s7 }
 0x50f   :  { %p2151_p9 = pnand %p2149_p8, %p2146_p7 }
 0x511   :  { %2154 = shalt.err (!%p2151_p9)
}
 0x512   :  { %s2166_s30 = smov 128   ;;  %s2167_s8 = smov 8  }
 0x513   :  { %1533 = dma.vmem_to_hbm [thread:$0]  %s1528_s0, 2048, %s3054_s7, [#allocation4], %s2166_s30, %s2166_s30, %s2167_s8  }
 0x514   :  { %2159 = dma.done.wait [#allocation4], 2048  }
 0x515   :  { %2160 = vsyncadd [#allocation4], 4294965248 }
 0x516   :  { %1537 = vsyncpa [#allocation3], 1 }
 0x517   :  { %1538 = vsyncpa [#allocation6], 1 }
 0x518   :  { %1539 = vsyncpa [#allocation4], 1 }

</bundles_post_ra>
